<compile_context>
chip_gen: v6e
topology: v6e:2x2x1
jax: 0.10.0
libtpu: 0.0.40
codegen_flags: <defaults>
</compile_context>

<pallas_src>
import math
import functools

import numpy as np
import jax
import jax.numpy as jnp
from jax.experimental import pallas as pl
from jax.experimental.pallas import tpu as pltpu


# ---------------- per-generation configuration (chosen once at import) ----------------

def _tpu_generation() -> int:
    try:
        kind = jax.devices()[0].device_kind.lower()
    except Exception:
        return 0
    for gen in (7, 6, 5, 4, 3, 2):
        if f"v{gen}" in kind:
            return gen
    return 0


_GEN = _tpu_generation()

# bf16 is the native MXU input dtype on v5e/v6e/v7x; accumulation stays f32.
MATMUL_DTYPE = jnp.bfloat16
# bf16 intermediate activations only where the epilogue math stays f32 (v6e/v7x).
_ACT_DTYPE = jnp.bfloat16 if _GEN >= 6 else jnp.float32

if _GEN >= 7:                       # v7x: 64 MiB physical VMEM -> conservative
    _TM, _TN, _TK = 256, 512, 512
    _VMEM_LIMIT = 48 * 1024 * 1024
elif _GEN in (5, 6):                # v5e/v6e: 128 MiB VMEM -> bigger tiles, fewer K passes
    _TM, _TN, _TK = 512, 1024, 512
    _VMEM_LIMIT = 96 * 1024 * 1024
else:                               # unknown: safe defaults, no VMEM override
    _TM, _TN, _TK = 256, 512, 512
    _VMEM_LIMIT = None


def _mosaic_params(dims):
    if _VMEM_LIMIT is None:
        return pltpu.CompilerParams(dimension_semantics=dims)
    return pltpu.CompilerParams(dimension_semantics=dims, vmem_limit_bytes=_VMEM_LIMIT)


def _tile_and_pad(dim, target):
    """tile == dim when dim <= target (full-dim block, always legal), else tile == target
    and the dim is padded up to a multiple of target so the grid divides evenly."""
    if dim <= target:
        return dim, dim
    padded = ((dim + target - 1) // target) * target
    return target, padded


def _pad_axis(x, axis, new_size):
    pad = new_size - x.shape[axis]
    if pad == 0:
        return x
    widths = [(0, 0)] * x.ndim
    widths[axis] = (0, pad)
    return jnp.pad(x, widths)


# ---------------- weight packing (done once at init, not per forward) ----------------

def pack_linear(w, b):
    """Pad a [K, N] weight to tile multiples and cast to MATMUL_DTYPE once."""
    K, N = w.shape
    _, Kp = _tile_and_pad(K, _TK)
    _, Np = _tile_and_pad(N, _TN)
    return dict(w=_pad_axis(_pad_axis(w, 0, Kp), 1, Np).astype(MATMUL_DTYPE),
                b=b.astype(jnp.float32))


def pack_linear_ln(w, b):
    """Same, but N (= model dim) stays un-padded: consumed by the fused matmul+residual+LN
    kernel, which keeps N as a single block for the LayerNorm epilogue."""
    K, N = w.shape
    _, Kp = _tile_and_pad(K, _TK)
    return dict(w=_pad_axis(w, 0, Kp).astype(MATMUL_DTYPE),
                b=b.astype(jnp.float32))


# ---------------- linear kernels ----------------

def _linear_kernel_acc_out(x_ref, w_ref, b_ref, o_ref, *, relu):
    """f32 output: accumulate directly into the k-invariant output block (no scratch)."""
    @pl.when(pl.program_id(2) == 0)
    def _():
        o_ref[...] = jnp.broadcast_to(b_ref[...], o_ref.shape)

    o_ref[...] += jnp.dot(x_ref[...], w_ref[...],
                          preferred_element_type=jnp.float32)

    if relu:
        @pl.when(pl.program_id(2) == pl.num_programs(2) - 1)
        def _():
            o_ref[...] = jnp.maximum(o_ref[...], 0.0)


def _linear_kernel_scratch(x_ref, w_ref, b_ref, o_ref, acc_ref, *, relu):
    """Low-precision output: keep an f32 VMEM accumulator, cast on finalize."""
    @pl.when(pl.program_id(2) == 0)
    def _():
        acc_ref[...] = jnp.broadcast_to(b_ref[...], acc_ref.shape)

    acc_ref[...] += jnp.dot(x_ref[...], w_ref[...],
                            preferred_element_type=jnp.float32)

    @pl.when(pl.program_id(2) == pl.num_programs(2) - 1)
    def _():
        y = acc_ref[...]
        if relu:
            y = jnp.maximum(y, 0.0)
        o_ref[...] = y.astype(o_ref.dtype)


def linear(x, p, relu=False, out_dtype=jnp.float32):
    """y = relu?(x @ w + b).  Tiled over (M, N, K), reduction axis last; weight is
    pre-padded / pre-cast at init and streamed in (K, N) tiles."""
    M, K = x.shape
    N = p['b'].shape[0]
    Kp, Np = p['w'].shape
    tm, Mp = _tile_and_pad(M, _TM)
    tn, _ = _tile_and_pad(N, _TN)
    tk, _ = _tile_and_pad(K, _TK)

    xp = _pad_axis(_pad_axis(x, 0, Mp), 1, Kp).astype(MATMUL_DTYPE)
    bp = _pad_axis(p['b'].reshape(1, N), 1, Np)

    use_scratch = np.dtype(out_dtype) != np.dtype(jnp.float32)
    kernel = functools.partial(
        _linear_kernel_scratch if use_scratch else _linear_kernel_acc_out, relu=relu)
    scratch = [pltpu.VMEM((tm, tn), jnp.float32)] if use_scratch else []

    out = pl.pallas_call(
        kernel,
        out_shape=jax.ShapeDtypeStruct((Mp, Np), out_dtype),
        grid=(Mp // tm, Np // tn, Kp // tk),
        in_specs=[pl.BlockSpec((tm, tk), lambda i, j, k: (i, k)),
                  pl.BlockSpec((tk, tn), lambda i, j, k: (k, j)),
                  pl.BlockSpec((1, tn), lambda i, j, k: (0, j))],
        out_specs=pl.BlockSpec((tm, tn), lambda i, j, k: (i, j)),
        scratch_shapes=scratch,
        compiler_params=_mosaic_params(("parallel", "parallel", "arbitrary")),
    )(xp, p['w'], bp)
    if (Mp, Np) != (M, N):
        out = out[:M, :N]
    return out


def _linear_res_ln_kernel(x_ref, w_ref, b_ref, r_ref, g_ref, bt_ref, o_ref, *, eps):
    @pl.when(pl.program_id(1) == 0)
    def _():
        o_ref[...] = jnp.broadcast_to(b_ref[...], o_ref.shape)

    o_ref[...] += jnp.dot(x_ref[...], w_ref[...],
                          preferred_element_type=jnp.float32)

    @pl.when(pl.program_id(1) == pl.num_programs(1) - 1)
    def _():
        h = o_ref[...] + r_ref[...]
        mean = jnp.mean(h, axis=-1, keepdims=True)
        var = jnp.mean(jnp.square(h - mean), axis=-1, keepdims=True)  # biased, like PyTorch LN
        o_ref[...] = (h - mean) * jax.lax.rsqrt(var + eps) * g_ref[...] + bt_ref[...]


def linear_residual_ln(x, p, residual, gamma, beta, eps=1e-5):
    """LayerNorm(residual + (x @ w + b)).  N (= model dim) is a single block so the
    residual-add + LN epilogue rides in the VPU/XLU slack of the matmul; K is tiled.
    Accumulates directly into the (k-invariant) f32 output block — no scratch."""
    M, K = x.shape
    Kp, N = p['w'].shape
    tm, Mp = _tile_and_pad(M, _TM)
    tk, _ = _tile_and_pad(K, _TK)

    xp = _pad_axis(_pad_axis(x, 0, Mp), 1, Kp).astype(MATMUL_DTYPE)
    rp = _pad_axis(residual, 0, Mp).astype(jnp.float32)

    out = pl.pallas_call(
        functools.partial(_linear_res_ln_kernel, eps=eps),
        out_shape=jax.ShapeDtypeStruct((Mp, N), jnp.float32),
        grid=(Mp // tm, Kp // tk),
        in_specs=[pl.BlockSpec((tm, tk), lambda i, k: (i, k)),
                  pl.BlockSpec((tk, N), lambda i, k: (k, 0)),
                  pl.BlockSpec((1, N), lambda i, k: (0, 0)),
                  pl.BlockSpec((tm, N), lambda i, k: (i, 0)),
                  pl.BlockSpec((1, N), lambda i, k: (0, 0)),
                  pl.BlockSpec((1, N), lambda i, k: (0, 0))],
        out_specs=pl.BlockSpec((tm, N), lambda i, k: (i, 0)),
        compiler_params=_mosaic_params(("parallel", "arbitrary")),
    )(xp, p['w'], p['b'].reshape(1, N), rp, gamma.reshape(1, N), beta.reshape(1, N))
    if Mp != M:
        out = out[:M]
    return out


# ---------------- attention kernels ----------------

def _mha_heads(q, k, v, mask, o_ref, num_heads):
    """q pre-scaled; q/k/v are VMEM-resident [L, D] values in MATMUL_DTYPE.  Each head's
    result is stored directly into its o_ref lane slice (no concatenate)."""
    D = q.shape[-1]
    Dh = D // num_heads
    for h in range(num_heads):                 # static unroll over heads
        sl = slice(h * Dh, (h + 1) * Dh)
        s = jax.lax.dot_general(q[:, sl], k[:, sl], (((1,), (1,)), ((), ())),
                                preferred_element_type=jnp.float32)
        if mask is not None:
            s = s + mask
        s = s - jnp.max(s, axis=-1, keepdims=True)
        p = jnp.exp(s)
        # approx reciprocal rides the EUP slot; causal/zero masks never fully mask a row.
        p = p * pl.reciprocal(jnp.sum(p, axis=-1, keepdims=True), approx=True)
        o_ref[0, :, sl] = jnp.dot(p.astype(v.dtype), v[:, sl],
                                  preferred_element_type=jnp.float32).astype(o_ref.dtype)


def _self_attn_kernel(qkv_ref, mask_ref, o_ref, *, num_heads, scale):
    D = o_ref.shape[-1]
    qkv = qkv_ref[0].astype(MATMUL_DTYPE)      # fused [L, 3D] block, sliced in VMEM
    q = qkv[:, :D] * scale                     # pre-scale q: L*D work, not L*L per head
    _mha_heads(q, qkv[:, D:2 * D], qkv[:, 2 * D:], mask_ref[...], o_ref, num_heads)


def _cross_attn_kernel(q_ref, kv_ref, o_ref, *, num_heads, scale):
    # No mask input at all for cross-attention (saves the zero-mask DMA/VMEM/add).
    D = o_ref.shape[-1]
    q = q_ref[0].astype(MATMUL_DTYPE) * scale
    kv = kv_ref[0].astype(MATMUL_DTYPE)        # fused [Lk, 2D] block, sliced in VMEM
    _mha_heads(q, kv[:, :D], kv[:, D:], None, o_ref, num_heads)


# TODO(synk): tile Lk/Lq with an online-softmax (flash-style) accumulator for long
# sequences so the per-step working set fits v7x's 64 MiB VMEM.
# TODO(synk): when head_dim % 128 == 0, move heads into the grid (grid=(B, H)) with
# column-block index_maps on the fused qkv tensor; the (8,128) block-shape constraint
# rules that out for small head_dim, so heads stay unrolled inside the kernel here.

def self_attention(qkv, mask, num_heads, scale):
    """qkv: [B, L, 3D] fused projection output, mask: [L, L] additive float mask."""
    B, L, D3 = qkv.shape
    D = D3 // 3
    return pl.pallas_call(
        functools.partial(_self_attn_kernel, num_heads=num_heads, scale=scale),
        out_shape=jax.ShapeDtypeStruct((B, L, D), jnp.float32),
        grid=(B,),
        in_specs=[pl.BlockSpec((1, L, D3), lambda b: (b, 0, 0)),
                  pl.BlockSpec((L, L), lambda b: (0, 0))],
        out_specs=pl.BlockSpec((1, L, D), lambda b: (b, 0, 0)),
        compiler_params=_mosaic_params(("parallel",)),
    )(qkv, mask)


def cross_attention(q, kv, num_heads, scale):
    """q: [B, Lq, D], kv: [B, Lk, 2D] fused key|value projection of the memory."""
    B, Lq, D = q.shape
    Lk = kv.shape[1]
    return pl.pallas_call(
        functools.partial(_cross_attn_kernel, num_heads=num_heads, scale=scale),
        out_shape=jax.ShapeDtypeStruct((B, Lq, D), jnp.float32),
        grid=(B,),
        in_specs=[pl.BlockSpec((1, Lq, D), lambda b: (b, 0, 0)),
                  pl.BlockSpec((1, Lk, 2 * D), lambda b: (b, 0, 0))],
        out_specs=pl.BlockSpec((1, Lq, D), lambda b: (b, 0, 0)),
        compiler_params=_mosaic_params(("parallel",)),
    )(q, kv)


# ---------------- model glue (plain JAX) ----------------

def self_attention_block(x, p, mask, num_heads):
    B, L, D = x.shape
    x2 = x.reshape(B * L, D)
    qkv = linear(x2, p['qkv'], out_dtype=_ACT_DTYPE)                 # one [D, 3D] matmul
    o = self_attention(qkv.reshape(B, L, 3 * D), mask, num_heads,
                       1.0 / math.sqrt(D // num_heads))
    return linear_residual_ln(o.reshape(B * L, D), p['out'], x2,
                              p['ln_g'], p['ln_b']).reshape(B, L, D)


def cross_attention_block(x, mem, p, num_heads):
    B, Lq, D = x.shape
    Lk = mem.shape[1]
    x2 = x.reshape(B * Lq, D)
    q = linear(x2, p['q'], out_dtype=_ACT_DTYPE).reshape(B, Lq, D)
    kv = linear(mem.reshape(B * Lk, D), p['kv'],
                out_dtype=_ACT_DTYPE).reshape(B, Lk, 2 * D)          # fused K|V matmul
    o = cross_attention(q, kv, num_heads, 1.0 / math.sqrt(D // num_heads))
    return linear_residual_ln(o.reshape(B * Lq, D), p['out'], x2,
                              p['ln_g'], p['ln_b']).reshape(B, Lq, D)


def ffn_block(x, lp):
    B, L, D = x.shape
    x2 = x.reshape(B * L, D)
    h = linear(x2, lp['lin1'], relu=True, out_dtype=_ACT_DTYPE)      # [B*L, F]
    return linear_residual_ln(h, lp['lin2'], x2,
                              lp['ln3_g'], lp['ln3_b']).reshape(B, L, D)


@functools.partial(jax.jit, static_argnames=('num_heads',))
def transformer_decoder_forward(params, encoder_outputs, tgt, tgt_mask, *, num_heads):
    # embedding lookup is a gather and the PE add is cheap glue -> left to XLA.
    emb = jnp.take(params['embedding'], tgt, axis=0)                 # [B, St, D]
    B, St, D = emb.shape
    x = emb + params['pe'][:, :St, :]
    mem = encoder_outputs                                            # [B, Ss, D]

    for lp in params['layers']:
        x = self_attention_block(x, lp['self_attn'], tgt_mask, num_heads)
        x = cross_attention_block(x, mem, lp['cross_attn'], num_heads)
        x = ffn_block(x, lp)                                         # dropout omitted: eval mode

    V = params['fc']['b'].shape[0]
    logits = linear(x.reshape(B * St, D), params['fc'])              # f32 logits
    return logits.reshape(B, St, V)


# ---------------- deterministic parameter init ----------------

def make_positional_encoding(d_model, max_len=1051):
    position = np.arange(max_len, dtype=np.float32)[:, None]
    div_term = np.exp(np.arange(0, d_model, 2, dtype=np.float32) *
                      (-math.log(10000.0) / d_model))
    pe = np.zeros((max_len, d_model), dtype=np.float32)
    pe[:, 0::2] = np.sin(position * div_term)
    pe[:, 1::2] = np.cos(position * div_term)
    return jnp.asarray(pe[None])            # [1, max_len, d_model]


def init_params(key, vocab_size, hidden_dim, num_layers, num_heads,
                dim_feedforward=2048):
    D, F = hidden_dim, dim_feedforward

    def dense(k, fan_in, fan_out):
        bound = 1.0 / math.sqrt(fan_in)
        kw, kb = jax.random.split(k)
        w = jax.random.uniform(kw, (fan_in, fan_out), jnp.float32, -bound, bound)
        b = jax.random.uniform(kb, (fan_out,), jnp.float32, -bound, bound)
        return w, b

    keys = jax.random.split(key, 2 + num_layers)
    fc_w, fc_b = dense(keys[1], D, vocab_size)
    params = {
        'embedding': jax.random.normal(keys[0], (vocab_size, D), jnp.float32),
        'pe': make_positional_encoding(D),
        'fc': pack_linear(fc_w, fc_b),
        'layers': [],
    }

    for l in range(num_layers):
        lk = jax.random.split(keys[2 + l], 6)

        # self-attention: fused QKV projection [D, 3D]
        wq, bq = dense(jax.random.fold_in(lk[0], 0), D, D)
        wk, bk = dense(jax.random.fold_in(lk[0], 1), D, D)
        wv, bv = dense(jax.random.fold_in(lk[0], 2), D, D)
        wo_s, bo_s = dense(lk[1], D, D)
        self_attn = dict(
            qkv=pack_linear(jnp.concatenate([wq, wk, wv], axis=1),
                            jnp.concatenate([bq, bk, bv])),
            out=pack_linear_ln(wo_s, bo_s),
            ln_g=jnp.ones((D,), jnp.float32), ln_b=jnp.zeros((D,), jnp.float32))

        # cross-attention: separate Q projection, fused K|V [D, 2D]
        cwq, cbq = dense(jax.random.fold_in(lk[2], 0), D, D)
        cwk, cbk = dense(jax.random.fold_in(lk[2], 1), D, D)
        cwv, cbv = dense(jax.random.fold_in(lk[2], 2), D, D)
        wo_c, bo_c = dense(lk[3], D, D)
        cross_attn = dict(
            q=pack_linear(cwq, cbq),
            kv=pack_linear(jnp.concatenate([cwk, cwv], axis=1),
                           jnp.concatenate([cbk, cbv])),
            out=pack_linear_ln(wo_c, bo_c),
            ln_g=jnp.ones((D,), jnp.float32), ln_b=jnp.zeros((D,), jnp.float32))

        lin1_w, lin1_b = dense(lk[4], D, F)
        lin2_w, lin2_b = dense(lk[5], F, D)
        params['layers'].append(dict(
            self_attn=self_attn, cross_attn=cross_attn,
            lin1=pack_linear(lin1_w, lin1_b),
            lin2=pack_linear_ln(lin2_w, lin2_b),
            ln3_g=jnp.ones((D,), jnp.float32), ln3_b=jnp.zeros((D,), jnp.float32)))
    return params


if __name__ == "__main__":
    vocab_size, hidden_dim, num_layers, num_heads = 50, 32, 2, 4
    B, S_tgt, S_src = 2, 8, 10

    key = jax.random.PRNGKey(0)
    kp, ke, kt = jax.random.split(key, 3)
    params = init_params(kp, vocab_size, hidden_dim, num_layers, num_heads)

    encoder_outputs = jax.random.normal(ke, (B, S_src, hidden_dim), jnp.float32)
    tgt = jax.random.randint(kt, (B, S_tgt), 0, vocab_size, dtype=jnp.int32)
    # standard additive causal mask (same as generate_square_subsequent_mask)
    tgt_mask = jnp.where(
        jnp.triu(jnp.ones((S_tgt, S_tgt), jnp.float32), k=1) == 1.0,
        jnp.float32(-jnp.inf), jnp.float32(0.0))

    out = transformer_decoder_forward(params, encoder_outputs, tgt, tgt_mask,
                                      num_heads=num_heads)
    out = jax.block_until_ready(out)
    assert out.shape == (B, S_tgt, vocab_size), out.shape
    assert bool(jnp.all(jnp.isfinite(out)))
    print("KERNEL_OK")
</pallas_src>

<mosaic_0001>
module attributes {stable_mosaic.version = 11 : i64} {
  func.func @_linear_res_ln_kernel(%arg0: i32, %arg1: i32, %arg2: memref<16x32xbf16, #tpu.memory_space<vmem>>, %arg3: memref<32x32xbf16, #tpu.memory_space<vmem>>, %arg4: memref<1x32xf32, #tpu.memory_space<vmem>>, %arg5: memref<16x32xf32, #tpu.memory_space<vmem>>, %arg6: memref<1x32xf32, #tpu.memory_space<vmem>>, %arg7: memref<1x32xf32, #tpu.memory_space<vmem>>, %arg8: memref<16x32xf32, #tpu.memory_space<vmem>>) attributes {dimension_semantics = [#tpu.dimension_semantics<parallel>, #tpu.dimension_semantics<arbitrary>], iteration_bounds = array<i64: 1, 1>, scalar_prefetch = 0 : i64, scratch_operands = 0 : i64, tpu.core_type = #tpu.core_type<tc>, window_params = [{transform_indices = @transform_0, window_bounds = array<i64: 16, 32>}, {transform_indices = @transform_1, window_bounds = array<i64: 32, 32>}, {pipeline_mode = #tpu.pipeline_mode<synchronous>, transform_indices = @transform_2, window_bounds = array<i64: 1, 32>}, {transform_indices = @transform_3, window_bounds = array<i64: 16, 32>}, {pipeline_mode = #tpu.pipeline_mode<synchronous>, transform_indices = @transform_4, window_bounds = array<i64: 1, 32>}, {pipeline_mode = #tpu.pipeline_mode<synchronous>, transform_indices = @transform_5, window_bounds = array<i64: 1, 32>}, {transform_indices = @transform_6, window_bounds = array<i64: 16, 32>}]} {
    %c0_i32 = arith.constant 0 : i32
    %0 = arith.cmpi eq, %arg1, %c0_i32 : i32
    %1 = arith.extui %0 : i1 to i32
    %c0_i32_0 = arith.constant 0 : i32
    %2 = arith.cmpi ne, %1, %c0_i32_0 : i32
    scf.if %2 {
      %c0_10 = arith.constant 0 : index
      %c0_11 = arith.constant 0 : index
      %12 = vector.load %arg4[%c0_10, %c0_11] : memref<1x32xf32, #tpu.memory_space<vmem>>, vector<1x32xf32>
      %13 = vector.shape_cast %12 : vector<1x32xf32> to vector<1x32xf32>
      %14 = vector.broadcast %13 : vector<1x32xf32> to vector<16x32xf32>
      %c0_12 = arith.constant 0 : index
      %c0_13 = arith.constant 0 : index
      %15 = vector.load %arg8[%c0_12, %c0_13] : memref<16x32xf32, #tpu.memory_space<vmem>>, vector<16x32xf32>
      tpu.vector_store %arg8[%c0_12, %c0_13], %14 {strides = array<i32>} : memref<16x32xf32, #tpu.memory_space<vmem>>, vector<16x32xf32>,
    } else {
    }
    %c0 = arith.constant 0 : index
    %c0_1 = arith.constant 0 : index
    %3 = vector.load %arg8[%c0, %c0_1] : memref<16x32xf32, #tpu.memory_space<vmem>>, vector<16x32xf32>
    %c0_2 = arith.constant 0 : index
    %c0_3 = arith.constant 0 : index
    %4 = vector.load %arg2[%c0_2, %c0_3] : memref<16x32xbf16, #tpu.memory_space<vmem>>, vector<16x32xbf16>
    %c0_4 = arith.constant 0 : index
    %c0_5 = arith.constant 0 : index
    %5 = vector.load %arg3[%c0_4, %c0_5] : memref<32x32xbf16, #tpu.memory_space<vmem>>, vector<32x32xbf16>
    %cst = arith.constant dense<0.000000e+00> : vector<16x32xf32>
    %6 = tpu.matmul %4, %5, %cst {dimension_numbers = #tpu.dot_dimension_numbers<[1], [0], [0], [1], [0, 0, 1, 1], [], []>} : vector<16x32xbf16>, vector<32x32xbf16>, vector<16x32xf32> -> vector<16x32xf32>
    %7 = arith.addf %3, %6 : vector<16x32xf32>
    %c0_6 = arith.constant 0 : index
    %c0_7 = arith.constant 0 : index
    %8 = vector.load %arg8[%c0_6, %c0_7] : memref<16x32xf32, #tpu.memory_space<vmem>>, vector<16x32xf32>
    tpu.vector_store %arg8[%c0_6, %c0_7], %7 {strides = array<i32>} : memref<16x32xf32, #tpu.memory_space<vmem>>, vector<16x32xf32>,
    %c0_i32_8 = arith.constant 0 : i32
    %9 = arith.cmpi eq, %arg1, %c0_i32_8 : i32
    %10 = arith.extui %9 : i1 to i32
    %c0_i32_9 = arith.constant 0 : i32
    %11 = arith.cmpi ne, %10, %c0_i32_9 : i32
    scf.if %11 {
      %c0_10 = arith.constant 0 : index
      %c0_11 = arith.constant 0 : index
      %12 = vector.load %arg8[%c0_10, %c0_11] : memref<16x32xf32, #tpu.memory_space<vmem>>, vector<16x32xf32>
      %c0_12 = arith.constant 0 : index
      %c0_13 = arith.constant 0 : index
      %13 = vector.load %arg5[%c0_12, %c0_13] : memref<16x32xf32, #tpu.memory_space<vmem>>, vector<16x32xf32>
      %14 = arith.addf %12, %13 : vector<16x32xf32>
      %cst_14 = arith.constant dense<0.000000e+00> : vector<16xf32>
      %15 = vector.multi_reduction <add>, %14, %cst_14 [1] : vector<16x32xf32> to vector<16xf32>
      %16 = vector.shape_cast %15 : vector<16xf32> to vector<16x1xf32>
      %cst_15 = arith.constant 3.200000e+01 : f32
      %17 = vector.broadcast %cst_15 : f32 to vector<16x1xf32>
      %18 = arith.divf %16, %17 : vector<16x1xf32>
      %19 = vector.broadcast %18 : vector<16x1xf32> to vector<16x32xf32>
      %20 = arith.subf %14, %19 : vector<16x32xf32>
      %21 = arith.mulf %20, %20 : vector<16x32xf32>
      %cst_16 = arith.constant dense<0.000000e+00> : vector<16xf32>
      %22 = vector.multi_reduction <add>, %21, %cst_16 [1] : vector<16x32xf32> to vector<16xf32>
      %23 = vector.shape_cast %22 : vector<16xf32> to vector<16x1xf32>
      %cst_17 = arith.constant 3.200000e+01 : f32
      %24 = vector.broadcast %cst_17 : f32 to vector<16x1xf32>
      %25 = arith.divf %23, %24 : vector<16x1xf32>
      %26 = vector.broadcast %18 : vector<16x1xf32> to vector<16x32xf32>
      %27 = arith.subf %14, %26 : vector<16x32xf32>
      %cst_18 = arith.constant 9.99999974E-6 : f32
      %28 = vector.broadcast %cst_18 : f32 to vector<16x1xf32>
      %29 = arith.addf %25, %28 : vector<16x1xf32>
      %30 = math.rsqrt %29 : vector<16x1xf32>
      %31 = vector.broadcast %30 : vector<16x1xf32> to vector<16x32xf32>
      %32 = arith.mulf %27, %31 : vector<16x32xf32>
      %c0_19 = arith.constant 0 : index
      %c0_20 = arith.constant 0 : index
      %33 = vector.load %arg6[%c0_19, %c0_20] : memref<1x32xf32, #tpu.memory_space<vmem>>, vector<1x32xf32>
      %34 = vector.broadcast %33 : vector<1x32xf32> to vector<16x32xf32>
      %35 = arith.mulf %32, %34 : vector<16x32xf32>
      %c0_21 = arith.constant 0 : index
      %c0_22 = arith.constant 0 : index
      %36 = vector.load %arg7[%c0_21, %c0_22] : memref<1x32xf32, #tpu.memory_space<vmem>>, vector<1x32xf32>
      %37 = vector.broadcast %36 : vector<1x32xf32> to vector<16x32xf32>
      %38 = arith.addf %35, %37 : vector<16x32xf32>
      %c0_23 = arith.constant 0 : index
      %c0_24 = arith.constant 0 : index
      %39 = vector.load %arg8[%c0_23, %c0_24] : memref<16x32xf32, #tpu.memory_space<vmem>>, vector<16x32xf32>
      tpu.vector_store %arg8[%c0_23, %c0_24], %38 {strides = array<i32>} : memref<16x32xf32, #tpu.memory_space<vmem>>, vector<16x32xf32>,
    } else {
    }
    return
  }
  func.func @transform_0(%arg0: i32, %arg1: i32) -> (i32, i32) {
    %c0_i32 = arith.constant 0 : i32
    return %arg0, %arg1 : i32, i32
  }
  func.func @transform_1(%arg0: i32, %arg1: i32) -> (i32, i32) {
    %c0_i32 = arith.constant 0 : i32
    %c0_i32_0 = arith.constant 0 : i32
    return %arg1, %c0_i32 : i32, i32
  }
  func.func @transform_2(%arg0: i32, %arg1: i32) -> (i32, i32) {
    %c0_i32 = arith.constant 0 : i32
    %c0_i32_0 = arith.constant 0 : i32
    %c0_i32_1 = arith.constant 0 : i32
    return %c0_i32, %c0_i32_0 : i32, i32
  }
  func.func @transform_3(%arg0: i32, %arg1: i32) -> (i32, i32) {
    %c0_i32 = arith.constant 0 : i32
    %c0_i32_0 = arith.constant 0 : i32
    return %arg0, %c0_i32 : i32, i32
  }
  func.func @transform_4(%arg0: i32, %arg1: i32) -> (i32, i32) {
    %c0_i32 = arith.constant 0 : i32
    %c0_i32_0 = arith.constant 0 : i32
    %c0_i32_1 = arith.constant 0 : i32
    return %c0_i32, %c0_i32_0 : i32, i32
  }
  func.func @transform_5(%arg0: i32, %arg1: i32) -> (i32, i32) {
    %c0_i32 = arith.constant 0 : i32
    %c0_i32_0 = arith.constant 0 : i32
    %c0_i32_1 = arith.constant 0 : i32
    return %c0_i32, %c0_i32_0 : i32, i32
  }
  func.func @transform_6(%arg0: i32, %arg1: i32) -> (i32, i32) {
    %c0_i32 = arith.constant 0 : i32
    %c0_i32_0 = arith.constant 0 : i32
    return %arg0, %c0_i32 : i32, i32
  }
}

module attributes {stable_mosaic.version = 11 : i64} {
  func.func @_self_attn_kernel(%arg0: i32, %arg1: memref<1x8x96xf32, #tpu.memory_space<vmem>>, %arg2: memref<8x8xf32, #tpu.memory_space<vmem>>, %arg3: memref<1x8x32xf32, #tpu.memory_space<vmem>>) attributes {dimension_semantics = [#tpu.dimension_semantics<parallel>], iteration_bounds = array<i64: 2>, scalar_prefetch = 0 : i64, scratch_operands = 0 : i64, tpu.core_type = #tpu.core_type<tc>, window_params = [{transform_indices = @transform_0, window_bounds = array<i64: 1, 8, 96>}, {pipeline_mode = #tpu.pipeline_mode<synchronous>, transform_indices = @transform_1, window_bounds = array<i64: 8, 8>}, {transform_indices = @transform_2, window_bounds = array<i64: 1, 8, 32>}]} {
    %c0 = arith.constant 0 : index
    %c0_0 = arith.constant 0 : index
    %c0_1 = arith.constant 0 : index
    %0 = vector.load %arg1[%c0, %c0_0, %c0_1] : memref<1x8x96xf32, #tpu.memory_space<vmem>>, vector<1x8x96xf32>
    %1 = vector.shape_cast %0 : vector<1x8x96xf32> to vector<8x96xf32>
    %2 = arith.truncf %1 : vector<8x96xf32> to vector<8x96xbf16>
    %3 = vector.extract_strided_slice %2 {offsets = [0, 0], sizes = [8, 32], strides = [1, 1]} : vector<8x96xbf16> to vector<8x32xbf16>
    %cst = arith.constant 3.535160e-01 : bf16
    %4 = vector.broadcast %cst : bf16 to vector<8x32xbf16>
    %5 = arith.mulf %3, %4 : vector<8x32xbf16>
    %6 = vector.extract_strided_slice %2 {offsets = [0, 32], sizes = [8, 32], strides = [1, 1]} : vector<8x96xbf16> to vector<8x32xbf16>
    %7 = vector.extract_strided_slice %2 {offsets = [0, 64], sizes = [8, 32], strides = [1, 1]} : vector<8x96xbf16> to vector<8x32xbf16>
    %c0_2 = arith.constant 0 : index
    %c0_3 = arith.constant 0 : index
    %8 = vector.load %arg2[%c0_2, %c0_3] : memref<8x8xf32, #tpu.memory_space<vmem>>, vector<8x8xf32>
    %9 = vector.extract_strided_slice %5 {offsets = [0, 0], sizes = [8, 8], strides = [1, 1]} : vector<8x32xbf16> to vector<8x8xbf16>
    %10 = vector.extract_strided_slice %6 {offsets = [0, 0], sizes = [8, 8], strides = [1, 1]} : vector<8x32xbf16> to vector<8x8xbf16>
    %cst_4 = arith.constant dense<0.000000e+00> : vector<8x8xf32>
    %11 = tpu.matmul %9, %10, %cst_4 {dimension_numbers = #tpu.dot_dimension_numbers<[1], [1], [0], [0], [0, 0, 1, 0], [], []>} : vector<8x8xbf16>, vector<8x8xbf16>, vector<8x8xf32> -> vector<8x8xf32>
    %12 = arith.addf %11, %8 : vector<8x8xf32>
    %cst_5 = arith.constant dense<0xFF800000> : vector<8xf32>
    %13 = vector.multi_reduction <maximumf>, %12, %cst_5 [1] : vector<8x8xf32> to vector<8xf32>
    %14 = vector.shape_cast %13 : vector<8xf32> to vector<8x1xf32>
    %15 = vector.broadcast %14 : vector<8x1xf32> to vector<8x8xf32>
    %16 = arith.subf %12, %15 : vector<8x8xf32>
    %17 = math.exp %16 : vector<8x8xf32>
    %cst_6 = arith.constant dense<0.000000e+00> : vector<8xf32>
    %18 = vector.multi_reduction <add>, %17, %cst_6 [1] : vector<8x8xf32> to vector<8xf32>
    %19 = vector.shape_cast %18 : vector<8xf32> to vector<8x1xf32>
    %20 = tpu.reciprocal %19 {approx = true} : vector<8x1xf32> -> vector<8x1xf32>
    %21 = vector.broadcast %20 : vector<8x1xf32> to vector<8x8xf32>
    %22 = arith.mulf %17, %21 : vector<8x8xf32>
    %23 = arith.truncf %22 : vector<8x8xf32> to vector<8x8xbf16>
    %24 = vector.extract_strided_slice %7 {offsets = [0, 0], sizes = [8, 8], strides = [1, 1]} : vector<8x32xbf16> to vector<8x8xbf16>
    %cst_7 = arith.constant dense<0.000000e+00> : vector<8x8xf32>
    %25 = tpu.matmul %23, %24, %cst_7 {dimension_numbers = #tpu.dot_dimension_numbers<[1], [0], [0], [1], [0, 0, 1, 1], [], []>} : vector<8x8xbf16>, vector<8x8xbf16>, vector<8x8xf32> -> vector<8x8xf32>
    %c0_8 = arith.constant 0 : index
    %c0_9 = arith.constant 0 : index
    %c0_10 = arith.constant 0 : index
    %26 = vector.load %arg3[%c0_8, %c0_9, %c0_10] : memref<1x8x32xf32, #tpu.memory_space<vmem>>, vector<1x8x8xf32>
    %27 = vector.shape_cast %26 : vector<1x8x8xf32> to vector<8x8xf32>
    %28 = vector.shape_cast %25 : vector<8x8xf32> to vector<1x8x8xf32>
    tpu.vector_store %arg3[%c0_8, %c0_9, %c0_10], %28 {strides = array<i32>} : memref<1x8x32xf32, #tpu.memory_space<vmem>>, vector<1x8x8xf32>,
    %29 = vector.extract_strided_slice %5 {offsets = [0, 8], sizes = [8, 8], strides = [1, 1]} : vector<8x32xbf16> to vector<8x8xbf16>
    %30 = vector.extract_strided_slice %6 {offsets = [0, 8], sizes = [8, 8], strides = [1, 1]} : vector<8x32xbf16> to vector<8x8xbf16>
    %cst_11 = arith.constant dense<0.000000e+00> : vector<8x8xf32>
    %31 = tpu.matmul %29, %30, %cst_11 {dimension_numbers = #tpu.dot_dimension_numbers<[1], [1], [0], [0], [0, 0, 1, 0], [], []>} : vector<8x8xbf16>, vector<8x8xbf16>, vector<8x8xf32> -> vector<8x8xf32>
    %32 = arith.addf %31, %8 : vector<8x8xf32>
    %cst_12 = arith.constant dense<0xFF800000> : vector<8xf32>
    %33 = vector.multi_reduction <maximumf>, %32, %cst_12 [1] : vector<8x8xf32> to vector<8xf32>
    %34 = vector.shape_cast %33 : vector<8xf32> to vector<8x1xf32>
    %35 = vector.broadcast %34 : vector<8x1xf32> to vector<8x8xf32>
    %36 = arith.subf %32, %35 : vector<8x8xf32>
    %37 = math.exp %36 : vector<8x8xf32>
    %cst_13 = arith.constant dense<0.000000e+00> : vector<8xf32>
    %38 = vector.multi_reduction <add>, %37, %cst_13 [1] : vector<8x8xf32> to vector<8xf32>
    %39 = vector.shape_cast %38 : vector<8xf32> to vector<8x1xf32>
    %40 = tpu.reciprocal %39 {approx = true} : vector<8x1xf32> -> vector<8x1xf32>
    %41 = vector.broadcast %40 : vector<8x1xf32> to vector<8x8xf32>
    %42 = arith.mulf %37, %41 : vector<8x8xf32>
    %43 = arith.truncf %42 : vector<8x8xf32> to vector<8x8xbf16>
    %44 = vector.extract_strided_slice %7 {offsets = [0, 8], sizes = [8, 8], strides = [1, 1]} : vector<8x32xbf16> to vector<8x8xbf16>
    %cst_14 = arith.constant dense<0.000000e+00> : vector<8x8xf32>
    %45 = tpu.matmul %43, %44, %cst_14 {dimension_numbers = #tpu.dot_dimension_numbers<[1], [0], [0], [1], [0, 0, 1, 1], [], []>} : vector<8x8xbf16>, vector<8x8xbf16>, vector<8x8xf32> -> vector<8x8xf32>
    %c0_15 = arith.constant 0 : index
    %c0_16 = arith.constant 0 : index
    %c8 = arith.constant 8 : index
    %46 = vector.load %arg3[%c0_15, %c0_16, %c8] : memref<1x8x32xf32, #tpu.memory_space<vmem>>, vector<1x8x8xf32>
    %47 = vector.shape_cast %46 : vector<1x8x8xf32> to vector<8x8xf32>
    %48 = vector.shape_cast %45 : vector<8x8xf32> to vector<1x8x8xf32>
    tpu.vector_store %arg3[%c0_15, %c0_16, %c8], %48 {strides = array<i32>} : memref<1x8x32xf32, #tpu.memory_space<vmem>>, vector<1x8x8xf32>,
    %49 = vector.extract_strided_slice %5 {offsets = [0, 16], sizes = [8, 8], strides = [1, 1]} : vector<8x32xbf16> to vector<8x8xbf16>
    %50 = vector.extract_strided_slice %6 {offsets = [0, 16], sizes = [8, 8], strides = [1, 1]} : vector<8x32xbf16> to vector<8x8xbf16>
    %cst_17 = arith.constant dense<0.000000e+00> : vector<8x8xf32>
    %51 = tpu.matmul %49, %50, %cst_17 {dimension_numbers = #tpu.dot_dimension_numbers<[1], [1], [0], [0], [0, 0, 1, 0], [], []>} : vector<8x8xbf16>, vector<8x8xbf16>, vector<8x8xf32> -> vector<8x8xf32>
    %52 = arith.addf %51, %8 : vector<8x8xf32>
    %cst_18 = arith.constant dense<0xFF800000> : vector<8xf32>
    %53 = vector.multi_reduction <maximumf>, %52, %cst_18 [1] : vector<8x8xf32> to vector<8xf32>
    %54 = vector.shape_cast %53 : vector<8xf32> to vector<8x1xf32>
    %55 = vector.broadcast %54 : vector<8x1xf32> to vector<8x8xf32>
    %56 = arith.subf %52, %55 : vector<8x8xf32>
    %57 = math.exp %56 : vector<8x8xf32>
    %cst_19 = arith.constant dense<0.000000e+00> : vector<8xf32>
    %58 = vector.multi_reduction <add>, %57, %cst_19 [1] : vector<8x8xf32> to vector<8xf32>
    %59 = vector.shape_cast %58 : vector<8xf32> to vector<8x1xf32>
    %60 = tpu.reciprocal %59 {approx = true} : vector<8x1xf32> -> vector<8x1xf32>
    %61 = vector.broadcast %60 : vector<8x1xf32> to vector<8x8xf32>
    %62 = arith.mulf %57, %61 : vector<8x8xf32>
    %63 = arith.truncf %62 : vector<8x8xf32> to vector<8x8xbf16>
    %64 = vector.extract_strided_slice %7 {offsets = [0, 16], sizes = [8, 8], strides = [1, 1]} : vector<8x32xbf16> to vector<8x8xbf16>
    %cst_20 = arith.constant dense<0.000000e+00> : vector<8x8xf32>
    %65 = tpu.matmul %63, %64, %cst_20 {dimension_numbers = #tpu.dot_dimension_numbers<[1], [0], [0], [1], [0, 0, 1, 1], [], []>} : vector<8x8xbf16>, vector<8x8xbf16>, vector<8x8xf32> -> vector<8x8xf32>
    %c0_21 = arith.constant 0 : index
    %c0_22 = arith.constant 0 : index
    %c16 = arith.constant 16 : index
    %66 = vector.load %arg3[%c0_21, %c0_22, %c16] : memref<1x8x32xf32, #tpu.memory_space<vmem>>, vector<1x8x8xf32>
    %67 = vector.shape_cast %66 : vector<1x8x8xf32> to vector<8x8xf32>
    %68 = vector.shape_cast %65 : vector<8x8xf32> to vector<1x8x8xf32>
    tpu.vector_store %arg3[%c0_21, %c0_22, %c16], %68 {strides = array<i32>} : memref<1x8x32xf32, #tpu.memory_space<vmem>>, vector<1x8x8xf32>,
    %69 = vector.extract_strided_slice %5 {offsets = [0, 24], sizes = [8, 8], strides = [1, 1]} : vector<8x32xbf16> to vector<8x8xbf16>
    %70 = vector.extract_strided_slice %6 {offsets = [0, 24], sizes = [8, 8], strides = [1, 1]} : vector<8x32xbf16> to vector<8x8xbf16>
    %cst_23 = arith.constant dense<0.000000e+00> : vector<8x8xf32>
    %71 = tpu.matmul %69, %70, %cst_23 {dimension_numbers = #tpu.dot_dimension_numbers<[1], [1], [0], [0], [0, 0, 1, 0], [], []>} : vector<8x8xbf16>, vector<8x8xbf16>, vector<8x8xf32> -> vector<8x8xf32>
    %72 = arith.addf %71, %8 : vector<8x8xf32>
    %cst_24 = arith.constant dense<0xFF800000> : vector<8xf32>
    %73 = vector.multi_reduction <maximumf>, %72, %cst_24 [1] : vector<8x8xf32> to vector<8xf32>
    %74 = vector.shape_cast %73 : vector<8xf32> to vector<8x1xf32>
    %75 = vector.broadcast %74 : vector<8x1xf32> to vector<8x8xf32>
    %76 = arith.subf %72, %75 : vector<8x8xf32>
    %77 = math.exp %76 : vector<8x8xf32>
    %cst_25 = arith.constant dense<0.000000e+00> : vector<8xf32>
    %78 = vector.multi_reduction <add>, %77, %cst_25 [1] : vector<8x8xf32> to vector<8xf32>
    %79 = vector.shape_cast %78 : vector<8xf32> to vector<8x1xf32>
    %80 = tpu.reciprocal %79 {approx = true} : vector<8x1xf32> -> vector<8x1xf32>
    %81 = vector.broadcast %80 : vector<8x1xf32> to vector<8x8xf32>
    %82 = arith.mulf %77, %81 : vector<8x8xf32>
    %83 = arith.truncf %82 : vector<8x8xf32> to vector<8x8xbf16>
    %84 = vector.extract_strided_slice %7 {offsets = [0, 24], sizes = [8, 8], strides = [1, 1]} : vector<8x32xbf16> to vector<8x8xbf16>
    %cst_26 = arith.constant dense<0.000000e+00> : vector<8x8xf32>
    %85 = tpu.matmul %83, %84, %cst_26 {dimension_numbers = #tpu.dot_dimension_numbers<[1], [0], [0], [1], [0, 0, 1, 1], [], []>} : vector<8x8xbf16>, vector<8x8xbf16>, vector<8x8xf32> -> vector<8x8xf32>
    %c0_27 = arith.constant 0 : index
    %c0_28 = arith.constant 0 : index
    %c24 = arith.constant 24 : index
    %86 = vector.load %arg3[%c0_27, %c0_28, %c24] : memref<1x8x32xf32, #tpu.memory_space<vmem>>, vector<1x8x8xf32>
    %87 = vector.shape_cast %86 : vector<1x8x8xf32> to vector<8x8xf32>
    %88 = vector.shape_cast %85 : vector<8x8xf32> to vector<1x8x8xf32>
    tpu.vector_store %arg3[%c0_27, %c0_28, %c24], %88 {strides = array<i32>} : memref<1x8x32xf32, #tpu.memory_space<vmem>>, vector<1x8x8xf32>,
    return
  }
  func.func @transform_0(%arg0: i32) -> (i32, i32, i32) {
    %c0_i32 = arith.constant 0 : i32
    %c0_i32_0 = arith.constant 0 : i32
    %c0_i32_1 = arith.constant 0 : i32
    return %arg0, %c0_i32, %c0_i32_0 : i32, i32, i32
  }
  func.func @transform_1(%arg0: i32) -> (i32, i32) {
    %c0_i32 = arith.constant 0 : i32
    %c0_i32_0 = arith.constant 0 : i32
    %c0_i32_1 = arith.constant 0 : i32
    return %c0_i32, %c0_i32_0 : i32, i32
  }
  func.func @transform_2(%arg0: i32) -> (i32, i32, i32) {
    %c0_i32 = arith.constant 0 : i32
    %c0_i32_0 = arith.constant 0 : i32
    %c0_i32_1 = arith.constant 0 : i32
    return %arg0, %c0_i32, %c0_i32_0 : i32, i32, i32
  }
}

module attributes {stable_mosaic.version = 11 : i64} {
  func.func @_linear_kernel_acc_out(%arg0: i32, %arg1: i32, %arg2: i32, %arg3: memref<16x32xbf16, #tpu.memory_space<vmem>>, %arg4: memref<32x96xbf16, #tpu.memory_space<vmem>>, %arg5: memref<1x96xf32, #tpu.memory_space<vmem>>, %arg6: memref<16x96xf32, #tpu.memory_space<vmem>>) attributes {dimension_semantics = [#tpu.dimension_semantics<parallel>, #tpu.dimension_semantics<parallel>, #tpu.dimension_semantics<arbitrary>], iteration_bounds = array<i64: 1, 1, 1>, scalar_prefetch = 0 : i64, scratch_operands = 0 : i64, tpu.core_type = #tpu.core_type<tc>, window_params = [{transform_indices = @transform_0, window_bounds = array<i64: 16, 32>}, {transform_indices = @transform_1, window_bounds = array<i64: 32, 96>}, {transform_indices = @transform_2, window_bounds = array<i64: 1, 96>}, {transform_indices = @transform_3, window_bounds = array<i64: 16, 96>}]} {
    %c0_i32 = arith.constant 0 : i32
    %0 = arith.cmpi eq, %arg2, %c0_i32 : i32
    %1 = arith.extui %0 : i1 to i32
    %c0_i32_0 = arith.constant 0 : i32
    %2 = arith.cmpi ne, %1, %c0_i32_0 : i32
    scf.if %2 {
      %c0_8 = arith.constant 0 : index
      %c0_9 = arith.constant 0 : index
      %9 = vector.load %arg5[%c0_8, %c0_9] : memref<1x96xf32, #tpu.memory_space<vmem>>, vector<1x96xf32>
      %10 = vector.shape_cast %9 : vector<1x96xf32> to vector<1x96xf32>
      %11 = vector.broadcast %10 : vector<1x96xf32> to vector<16x96xf32>
      %c0_10 = arith.constant 0 : index
      %c0_11 = arith.constant 0 : index
      %12 = vector.load %arg6[%c0_10, %c0_11] : memref<16x96xf32, #tpu.memory_space<vmem>>, vector<16x96xf32>
      tpu.vector_store %arg6[%c0_10, %c0_11], %11 {strides = array<i32>} : memref<16x96xf32, #tpu.memory_space<vmem>>, vector<16x96xf32>,
    } else {
    }
    %c0 = arith.constant 0 : index
    %c0_1 = arith.constant 0 : index
    %3 = vector.load %arg6[%c0, %c0_1] : memref<16x96xf32, #tpu.memory_space<vmem>>, vector<16x96xf32>
    %c0_2 = arith.constant 0 : index
    %c0_3 = arith.constant 0 : index
    %4 = vector.load %arg3[%c0_2, %c0_3] : memref<16x32xbf16, #tpu.memory_space<vmem>>, vector<16x32xbf16>
    %c0_4 = arith.constant 0 : index
    %c0_5 = arith.constant 0 : index
    %5 = vector.load %arg4[%c0_4, %c0_5] : memref<32x96xbf16, #tpu.memory_space<vmem>>, vector<32x96xbf16>
    %cst = arith.constant dense<0.000000e+00> : vector<16x96xf32>
    %6 = tpu.matmul %4, %5, %cst {dimension_numbers = #tpu.dot_dimension_numbers<[1], [0], [0], [1], [0, 0, 1, 1], [], []>} : vector<16x32xbf16>, vector<32x96xbf16>, vector<16x96xf32> -> vector<16x96xf32>
    %7 = arith.addf %3, %6 : vector<16x96xf32>
    %c0_6 = arith.constant 0 : index
    %c0_7 = arith.constant 0 : index
    %8 = vector.load %arg6[%c0_6, %c0_7] : memref<16x96xf32, #tpu.memory_space<vmem>>, vector<16x96xf32>
    tpu.vector_store %arg6[%c0_6, %c0_7], %7 {strides = array<i32>} : memref<16x96xf32, #tpu.memory_space<vmem>>, vector<16x96xf32>,
    return
  }
  func.func @transform_0(%arg0: i32, %arg1: i32, %arg2: i32) -> (i32, i32) {
    %c0_i32 = arith.constant 0 : i32
    return %arg0, %arg2 : i32, i32
  }
  func.func @transform_1(%arg0: i32, %arg1: i32, %arg2: i32) -> (i32, i32) {
    %c0_i32 = arith.constant 0 : i32
    return %arg2, %arg1 : i32, i32
  }
  func.func @transform_2(%arg0: i32, %arg1: i32, %arg2: i32) -> (i32, i32) {
    %c0_i32 = arith.constant 0 : i32
    %c0_i32_0 = arith.constant 0 : i32
    return %c0_i32, %arg1 : i32, i32
  }
  func.func @transform_3(%arg0: i32, %arg1: i32, %arg2: i32) -> (i32, i32) {
    %c0_i32 = arith.constant 0 : i32
    return %arg0, %arg1 : i32, i32
  }
}

module attributes {stable_mosaic.version = 11 : i64} {
  func.func @_linear_kernel_acc_out(%arg0: i32, %arg1: i32, %arg2: i32, %arg3: memref<16x32xbf16, #tpu.memory_space<vmem>>, %arg4: memref<32x32xbf16, #tpu.memory_space<vmem>>, %arg5: memref<1x32xf32, #tpu.memory_space<vmem>>, %arg6: memref<16x32xf32, #tpu.memory_space<vmem>>) attributes {dimension_semantics = [#tpu.dimension_semantics<parallel>, #tpu.dimension_semantics<parallel>, #tpu.dimension_semantics<arbitrary>], iteration_bounds = array<i64: 1, 1, 1>, scalar_prefetch = 0 : i64, scratch_operands = 0 : i64, tpu.core_type = #tpu.core_type<tc>, window_params = [{transform_indices = @transform_0, window_bounds = array<i64: 16, 32>}, {transform_indices = @transform_1, window_bounds = array<i64: 32, 32>}, {transform_indices = @transform_2, window_bounds = array<i64: 1, 32>}, {transform_indices = @transform_3, window_bounds = array<i64: 16, 32>}]} {
    %c0_i32 = arith.constant 0 : i32
    %0 = arith.cmpi eq, %arg2, %c0_i32 : i32
    %1 = arith.extui %0 : i1 to i32
    %c0_i32_0 = arith.constant 0 : i32
    %2 = arith.cmpi ne, %1, %c0_i32_0 : i32
    scf.if %2 {
      %c0_8 = arith.constant 0 : index
      %c0_9 = arith.constant 0 : index
      %9 = vector.load %arg5[%c0_8, %c0_9] : memref<1x32xf32, #tpu.memory_space<vmem>>, vector<1x32xf32>
      %10 = vector.shape_cast %9 : vector<1x32xf32> to vector<1x32xf32>
      %11 = vector.broadcast %10 : vector<1x32xf32> to vector<16x32xf32>
      %c0_10 = arith.constant 0 : index
      %c0_11 = arith.constant 0 : index
      %12 = vector.load %arg6[%c0_10, %c0_11] : memref<16x32xf32, #tpu.memory_space<vmem>>, vector<16x32xf32>
      tpu.vector_store %arg6[%c0_10, %c0_11], %11 {strides = array<i32>} : memref<16x32xf32, #tpu.memory_space<vmem>>, vector<16x32xf32>,
    } else {
    }
    %c0 = arith.constant 0 : index
    %c0_1 = arith.constant 0 : index
    %3 = vector.load %arg6[%c0, %c0_1] : memref<16x32xf32, #tpu.memory_space<vmem>>, vector<16x32xf32>
    %c0_2 = arith.constant 0 : index
    %c0_3 = arith.constant 0 : index
    %4 = vector.load %arg3[%c0_2, %c0_3] : memref<16x32xbf16, #tpu.memory_space<vmem>>, vector<16x32xbf16>
    %c0_4 = arith.constant 0 : index
    %c0_5 = arith.constant 0 : index
    %5 = vector.load %arg4[%c0_4, %c0_5] : memref<32x32xbf16, #tpu.memory_space<vmem>>, vector<32x32xbf16>
    %cst = arith.constant dense<0.000000e+00> : vector<16x32xf32>
    %6 = tpu.matmul %4, %5, %cst {dimension_numbers = #tpu.dot_dimension_numbers<[1], [0], [0], [1], [0, 0, 1, 1], [], []>} : vector<16x32xbf16>, vector<32x32xbf16>, vector<16x32xf32> -> vector<16x32xf32>
    %7 = arith.addf %3, %6 : vector<16x32xf32>
    %c0_6 = arith.constant 0 : index
    %c0_7 = arith.constant 0 : index
    %8 = vector.load %arg6[%c0_6, %c0_7] : memref<16x32xf32, #tpu.memory_space<vmem>>, vector<16x32xf32>
    tpu.vector_store %arg6[%c0_6, %c0_7], %7 {strides = array<i32>} : memref<16x32xf32, #tpu.memory_space<vmem>>, vector<16x32xf32>,
    return
  }
  func.func @transform_0(%arg0: i32, %arg1: i32, %arg2: i32) -> (i32, i32) {
    %c0_i32 = arith.constant 0 : i32
    return %arg0, %arg2 : i32, i32
  }
  func.func @transform_1(%arg0: i32, %arg1: i32, %arg2: i32) -> (i32, i32) {
    %c0_i32 = arith.constant 0 : i32
    return %arg2, %arg1 : i32, i32
  }
  func.func @transform_2(%arg0: i32, %arg1: i32, %arg2: i32) -> (i32, i32) {
    %c0_i32 = arith.constant 0 : i32
    %c0_i32_0 = arith.constant 0 : i32
    return %c0_i32, %arg1 : i32, i32
  }
  func.func @transform_3(%arg0: i32, %arg1: i32, %arg2: i32) -> (i32, i32) {
    %c0_i32 = arith.constant 0 : i32
    return %arg0, %arg1 : i32, i32
  }
}

module attributes {stable_mosaic.version = 11 : i64} {
  func.func @_linear_kernel_acc_out(%arg0: i32, %arg1: i32, %arg2: i32, %arg3: memref<20x32xbf16, #tpu.memory_space<vmem>>, %arg4: memref<32x64xbf16, #tpu.memory_space<vmem>>, %arg5: memref<1x64xf32, #tpu.memory_space<vmem>>, %arg6: memref<20x64xf32, #tpu.memory_space<vmem>>) attributes {dimension_semantics = [#tpu.dimension_semantics<parallel>, #tpu.dimension_semantics<parallel>, #tpu.dimension_semantics<arbitrary>], iteration_bounds = array<i64: 1, 1, 1>, scalar_prefetch = 0 : i64, scratch_operands = 0 : i64, tpu.core_type = #tpu.core_type<tc>, window_params = [{transform_indices = @transform_0, window_bounds = array<i64: 20, 32>}, {transform_indices = @transform_1, window_bounds = array<i64: 32, 64>}, {transform_indices = @transform_2, window_bounds = array<i64: 1, 64>}, {transform_indices = @transform_3, window_bounds = array<i64: 20, 64>}]} {
    %c0_i32 = arith.constant 0 : i32
    %0 = arith.cmpi eq, %arg2, %c0_i32 : i32
    %1 = arith.extui %0 : i1 to i32
    %c0_i32_0 = arith.constant 0 : i32
    %2 = arith.cmpi ne, %1, %c0_i32_0 : i32
    scf.if %2 {
      %c0_8 = arith.constant 0 : index
      %c0_9 = arith.constant 0 : index
      %9 = vector.load %arg5[%c0_8, %c0_9] : memref<1x64xf32, #tpu.memory_space<vmem>>, vector<1x64xf32>
      %10 = vector.shape_cast %9 : vector<1x64xf32> to vector<1x64xf32>
      %11 = vector.broadcast %10 : vector<1x64xf32> to vector<20x64xf32>
      %c0_10 = arith.constant 0 : index
      %c0_11 = arith.constant 0 : index
      %12 = vector.load %arg6[%c0_10, %c0_11] : memref<20x64xf32, #tpu.memory_space<vmem>>, vector<20x64xf32>
      tpu.vector_store %arg6[%c0_10, %c0_11], %11 {strides = array<i32>} : memref<20x64xf32, #tpu.memory_space<vmem>>, vector<20x64xf32>,
    } else {
    }
    %c0 = arith.constant 0 : index
    %c0_1 = arith.constant 0 : index
    %3 = vector.load %arg6[%c0, %c0_1] : memref<20x64xf32, #tpu.memory_space<vmem>>, vector<20x64xf32>
    %c0_2 = arith.constant 0 : index
    %c0_3 = arith.constant 0 : index
    %4 = vector.load %arg3[%c0_2, %c0_3] : memref<20x32xbf16, #tpu.memory_space<vmem>>, vector<20x32xbf16>
    %c0_4 = arith.constant 0 : index
    %c0_5 = arith.constant 0 : index
    %5 = vector.load %arg4[%c0_4, %c0_5] : memref<32x64xbf16, #tpu.memory_space<vmem>>, vector<32x64xbf16>
    %cst = arith.constant dense<0.000000e+00> : vector<20x64xf32>
    %6 = tpu.matmul %4, %5, %cst {dimension_numbers = #tpu.dot_dimension_numbers<[1], [0], [0], [1], [0, 0, 1, 1], [], []>} : vector<20x32xbf16>, vector<32x64xbf16>, vector<20x64xf32> -> vector<20x64xf32>
    %7 = arith.addf %3, %6 : vector<20x64xf32>
    %c0_6 = arith.constant 0 : index
    %c0_7 = arith.constant 0 : index
    %8 = vector.load %arg6[%c0_6, %c0_7] : memref<20x64xf32, #tpu.memory_space<vmem>>, vector<20x64xf32>
    tpu.vector_store %arg6[%c0_6, %c0_7], %7 {strides = array<i32>} : memref<20x64xf32, #tpu.memory_space<vmem>>, vector<20x64xf32>,
    return
  }
  func.func @transform_0(%arg0: i32, %arg1: i32, %arg2: i32) -> (i32, i32) {
    %c0_i32 = arith.constant 0 : i32
    return %arg0, %arg2 : i32, i32
  }
  func.func @transform_1(%arg0: i32, %arg1: i32, %arg2: i32) -> (i32, i32) {
    %c0_i32 = arith.constant 0 : i32
    return %arg2, %arg1 : i32, i32
  }
  func.func @transform_2(%arg0: i32, %arg1: i32, %arg2: i32) -> (i32, i32) {
    %c0_i32 = arith.constant 0 : i32
    %c0_i32_0 = arith.constant 0 : i32
    return %c0_i32, %arg1 : i32, i32
  }
  func.func @transform_3(%arg0: i32, %arg1: i32, %arg2: i32) -> (i32, i32) {
    %c0_i32 = arith.constant 0 : i32
    return %arg0, %arg1 : i32, i32
  }
}

module attributes {stable_mosaic.version = 11 : i64} {
  func.func @_linear_kernel_acc_out(%arg0: i32, %arg1: i32, %arg2: i32, %arg3: memref<16x32xbf16, #tpu.memory_space<vmem>>, %arg4: memref<32x512xbf16, #tpu.memory_space<vmem>>, %arg5: memref<1x512xf32, #tpu.memory_space<vmem>>, %arg6: memref<16x512xf32, #tpu.memory_space<vmem>>) attributes {dimension_semantics = [#tpu.dimension_semantics<parallel>, #tpu.dimension_semantics<parallel>, #tpu.dimension_semantics<arbitrary>], iteration_bounds = array<i64: 1, 4, 1>, scalar_prefetch = 0 : i64, scratch_operands = 0 : i64, tpu.core_type = #tpu.core_type<tc>, window_params = [{transform_indices = @transform_0, window_bounds = array<i64: 16, 32>}, {transform_indices = @transform_1, window_bounds = array<i64: 32, 512>}, {transform_indices = @transform_2, window_bounds = array<i64: 1, 512>}, {transform_indices = @transform_3, window_bounds = array<i64: 16, 512>}]} {
    %c0_i32 = arith.constant 0 : i32
    %0 = arith.cmpi eq, %arg2, %c0_i32 : i32
    %1 = arith.extui %0 : i1 to i32
    %c0_i32_0 = arith.constant 0 : i32
    %2 = arith.cmpi ne, %1, %c0_i32_0 : i32
    scf.if %2 {
      %c0_10 = arith.constant 0 : index
      %c0_11 = arith.constant 0 : index
      %12 = vector.load %arg5[%c0_10, %c0_11] : memref<1x512xf32, #tpu.memory_space<vmem>>, vector<1x512xf32>
      %13 = vector.shape_cast %12 : vector<1x512xf32> to vector<1x512xf32>
      %14 = vector.broadcast %13 : vector<1x512xf32> to vector<16x512xf32>
      %c0_12 = arith.constant 0 : index
      %c0_13 = arith.constant 0 : index
      %15 = vector.load %arg6[%c0_12, %c0_13] : memref<16x512xf32, #tpu.memory_space<vmem>>, vector<16x512xf32>
      tpu.vector_store %arg6[%c0_12, %c0_13], %14 {strides = array<i32>} : memref<16x512xf32, #tpu.memory_space<vmem>>, vector<16x512xf32>,
    } else {
    }
    %c0 = arith.constant 0 : index
    %c0_1 = arith.constant 0 : index
    %3 = vector.load %arg6[%c0, %c0_1] : memref<16x512xf32, #tpu.memory_space<vmem>>, vector<16x512xf32>
    %c0_2 = arith.constant 0 : index
    %c0_3 = arith.constant 0 : index
    %4 = vector.load %arg3[%c0_2, %c0_3] : memref<16x32xbf16, #tpu.memory_space<vmem>>, vector<16x32xbf16>
    %c0_4 = arith.constant 0 : index
    %c0_5 = arith.constant 0 : index
    %5 = vector.load %arg4[%c0_4, %c0_5] : memref<32x512xbf16, #tpu.memory_space<vmem>>, vector<32x512xbf16>
    %cst = arith.constant dense<0.000000e+00> : vector<16x512xf32>
    %6 = tpu.matmul %4, %5, %cst {dimension_numbers = #tpu.dot_dimension_numbers<[1], [0], [0], [1], [0, 0, 1, 1], [], []>} : vector<16x32xbf16>, vector<32x512xbf16>, vector<16x512xf32> -> vector<16x512xf32>
    %7 = arith.addf %3, %6 : vector<16x512xf32>
    %c0_6 = arith.constant 0 : index
    %c0_7 = arith.constant 0 : index
    %8 = vector.load %arg6[%c0_6, %c0_7] : memref<16x512xf32, #tpu.memory_space<vmem>>, vector<16x512xf32>
    tpu.vector_store %arg6[%c0_6, %c0_7], %7 {strides = array<i32>} : memref<16x512xf32, #tpu.memory_space<vmem>>, vector<16x512xf32>,
    %c0_i32_8 = arith.constant 0 : i32
    %9 = arith.cmpi eq, %arg2, %c0_i32_8 : i32
    %10 = arith.extui %9 : i1 to i32
    %c0_i32_9 = arith.constant 0 : i32
    %11 = arith.cmpi ne, %10, %c0_i32_9 : i32
    scf.if %11 {
      %c0_10 = arith.constant 0 : index
      %c0_11 = arith.constant 0 : index
      %12 = vector.load %arg6[%c0_10, %c0_11] : memref<16x512xf32, #tpu.memory_space<vmem>>, vector<16x512xf32>
      %cst_12 = arith.constant 0.000000e+00 : f32
      %13 = vector.broadcast %cst_12 : f32 to vector<16x512xf32>
      %14 = arith.maximumf %12, %13 : vector<16x512xf32>
      %c0_13 = arith.constant 0 : index
      %c0_14 = arith.constant 0 : index
      %15 = vector.load %arg6[%c0_13, %c0_14] : memref<16x512xf32, #tpu.memory_space<vmem>>, vector<16x512xf32>
      tpu.vector_store %arg6[%c0_13, %c0_14], %14 {strides = array<i32>} : memref<16x512xf32, #tpu.memory_space<vmem>>, vector<16x512xf32>,
    } else {
    }
    return
  }
  func.func @transform_0(%arg0: i32, %arg1: i32, %arg2: i32) -> (i32, i32) {
    %c0_i32 = arith.constant 0 : i32
    return %arg0, %arg2 : i32, i32
  }
  func.func @transform_1(%arg0: i32, %arg1: i32, %arg2: i32) -> (i32, i32) {
    %c0_i32 = arith.constant 0 : i32
    return %arg2, %arg1 : i32, i32
  }
  func.func @transform_2(%arg0: i32, %arg1: i32, %arg2: i32) -> (i32, i32) {
    %c0_i32 = arith.constant 0 : i32
    %c0_i32_0 = arith.constant 0 : i32
    return %c0_i32, %arg1 : i32, i32
  }
  func.func @transform_3(%arg0: i32, %arg1: i32, %arg2: i32) -> (i32, i32) {
    %c0_i32 = arith.constant 0 : i32
    return %arg0, %arg1 : i32, i32
  }
}

module attributes {stable_mosaic.version = 11 : i64} {
  func.func @_cross_attn_kernel(%arg0: i32, %arg1: memref<1x8x32xf32, #tpu.memory_space<vmem>>, %arg2: memref<1x10x64xf32, #tpu.memory_space<vmem>>, %arg3: memref<1x8x32xf32, #tpu.memory_space<vmem>>) attributes {dimension_semantics = [#tpu.dimension_semantics<parallel>], iteration_bounds = array<i64: 2>, scalar_prefetch = 0 : i64, scratch_operands = 0 : i64, tpu.core_type = #tpu.core_type<tc>, window_params = [{transform_indices = @transform_0, window_bounds = array<i64: 1, 8, 32>}, {transform_indices = @transform_1, window_bounds = array<i64: 1, 10, 64>}, {transform_indices = @transform_2, window_bounds = array<i64: 1, 8, 32>}]} {
    %c0 = arith.constant 0 : index
    %c0_0 = arith.constant 0 : index
    %c0_1 = arith.constant 0 : index
    %0 = vector.load %arg1[%c0, %c0_0, %c0_1] : memref<1x8x32xf32, #tpu.memory_space<vmem>>, vector<1x8x32xf32>
    %1 = vector.shape_cast %0 : vector<1x8x32xf32> to vector<8x32xf32>
    %2 = arith.truncf %1 : vector<8x32xf32> to vector<8x32xbf16>
    %cst = arith.constant 3.535160e-01 : bf16
    %3 = vector.broadcast %cst : bf16 to vector<8x32xbf16>
    %4 = arith.mulf %2, %3 : vector<8x32xbf16>
    %c0_2 = arith.constant 0 : index
    %c0_3 = arith.constant 0 : index
    %c0_4 = arith.constant 0 : index
    %5 = vector.load %arg2[%c0_2, %c0_3, %c0_4] : memref<1x10x64xf32, #tpu.memory_space<vmem>>, vector<1x10x64xf32>
    %6 = vector.shape_cast %5 : vector<1x10x64xf32> to vector<10x64xf32>
    %7 = arith.truncf %6 : vector<10x64xf32> to vector<10x64xbf16>
    %8 = vector.extract_strided_slice %7 {offsets = [0, 0], sizes = [10, 32], strides = [1, 1]} : vector<10x64xbf16> to vector<10x32xbf16>
    %9 = vector.extract_strided_slice %7 {offsets = [0, 32], sizes = [10, 32], strides = [1, 1]} : vector<10x64xbf16> to vector<10x32xbf16>
    %10 = vector.extract_strided_slice %4 {offsets = [0, 0], sizes = [8, 8], strides = [1, 1]} : vector<8x32xbf16> to vector<8x8xbf16>
    %11 = vector.extract_strided_slice %8 {offsets = [0, 0], sizes = [10, 8], strides = [1, 1]} : vector<10x32xbf16> to vector<10x8xbf16>
    %cst_5 = arith.constant dense<0.000000e+00> : vector<8x10xf32>
    %12 = tpu.matmul %10, %11, %cst_5 {dimension_numbers = #tpu.dot_dimension_numbers<[1], [1], [0], [0], [0, 0, 1, 0], [], []>} : vector<8x8xbf16>, vector<10x8xbf16>, vector<8x10xf32> -> vector<8x10xf32>
    %cst_6 = arith.constant dense<0xFF800000> : vector<8xf32>
    %13 = vector.multi_reduction <maximumf>, %12, %cst_6 [1] : vector<8x10xf32> to vector<8xf32>
    %14 = vector.shape_cast %13 : vector<8xf32> to vector<8x1xf32>
    %15 = vector.broadcast %14 : vector<8x1xf32> to vector<8x10xf32>
    %16 = arith.subf %12, %15 : vector<8x10xf32>
    %17 = math.exp %16 : vector<8x10xf32>
    %cst_7 = arith.constant dense<0.000000e+00> : vector<8xf32>
    %18 = vector.multi_reduction <add>, %17, %cst_7 [1] : vector<8x10xf32> to vector<8xf32>
    %19 = vector.shape_cast %18 : vector<8xf32> to vector<8x1xf32>
    %20 = tpu.reciprocal %19 {approx = true} : vector<8x1xf32> -> vector<8x1xf32>
    %21 = vector.broadcast %20 : vector<8x1xf32> to vector<8x10xf32>
    %22 = arith.mulf %17, %21 : vector<8x10xf32>
    %23 = arith.truncf %22 : vector<8x10xf32> to vector<8x10xbf16>
    %24 = vector.extract_strided_slice %9 {offsets = [0, 0], sizes = [10, 8], strides = [1, 1]} : vector<10x32xbf16> to vector<10x8xbf16>
    %cst_8 = arith.constant dense<0.000000e+00> : vector<8x8xf32>
    %25 = tpu.matmul %23, %24, %cst_8 {dimension_numbers = #tpu.dot_dimension_numbers<[1], [0], [0], [1], [0, 0, 1, 1], [], []>} : vector<8x10xbf16>, vector<10x8xbf16>, vector<8x8xf32> -> vector<8x8xf32>
    %c0_9 = arith.constant 0 : index
    %c0_10 = arith.constant 0 : index
    %c0_11 = arith.constant 0 : index
    %26 = vector.load %arg3[%c0_9, %c0_10, %c0_11] : memref<1x8x32xf32, #tpu.memory_space<vmem>>, vector<1x8x8xf32>
    %27 = vector.shape_cast %26 : vector<1x8x8xf32> to vector<8x8xf32>
    %28 = vector.shape_cast %25 : vector<8x8xf32> to vector<1x8x8xf32>
    tpu.vector_store %arg3[%c0_9, %c0_10, %c0_11], %28 {strides = array<i32>} : memref<1x8x32xf32, #tpu.memory_space<vmem>>, vector<1x8x8xf32>,
    %29 = vector.extract_strided_slice %4 {offsets = [0, 8], sizes = [8, 8], strides = [1, 1]} : vector<8x32xbf16> to vector<8x8xbf16>
    %30 = vector.extract_strided_slice %8 {offsets = [0, 8], sizes = [10, 8], strides = [1, 1]} : vector<10x32xbf16> to vector<10x8xbf16>
    %cst_12 = arith.constant dense<0.000000e+00> : vector<8x10xf32>
    %31 = tpu.matmul %29, %30, %cst_12 {dimension_numbers = #tpu.dot_dimension_numbers<[1], [1], [0], [0], [0, 0, 1, 0], [], []>} : vector<8x8xbf16>, vector<10x8xbf16>, vector<8x10xf32> -> vector<8x10xf32>
    %cst_13 = arith.constant dense<0xFF800000> : vector<8xf32>
    %32 = vector.multi_reduction <maximumf>, %31, %cst_13 [1] : vector<8x10xf32> to vector<8xf32>
    %33 = vector.shape_cast %32 : vector<8xf32> to vector<8x1xf32>
    %34 = vector.broadcast %33 : vector<8x1xf32> to vector<8x10xf32>
    %35 = arith.subf %31, %34 : vector<8x10xf32>
    %36 = math.exp %35 : vector<8x10xf32>
    %cst_14 = arith.constant dense<0.000000e+00> : vector<8xf32>
    %37 = vector.multi_reduction <add>, %36, %cst_14 [1] : vector<8x10xf32> to vector<8xf32>
    %38 = vector.shape_cast %37 : vector<8xf32> to vector<8x1xf32>
    %39 = tpu.reciprocal %38 {approx = true} : vector<8x1xf32> -> vector<8x1xf32>
    %40 = vector.broadcast %39 : vector<8x1xf32> to vector<8x10xf32>
    %41 = arith.mulf %36, %40 : vector<8x10xf32>
    %42 = arith.truncf %41 : vector<8x10xf32> to vector<8x10xbf16>
    %43 = vector.extract_strided_slice %9 {offsets = [0, 8], sizes = [10, 8], strides = [1, 1]} : vector<10x32xbf16> to vector<10x8xbf16>
    %cst_15 = arith.constant dense<0.000000e+00> : vector<8x8xf32>
    %44 = tpu.matmul %42, %43, %cst_15 {dimension_numbers = #tpu.dot_dimension_numbers<[1], [0], [0], [1], [0, 0, 1, 1], [], []>} : vector<8x10xbf16>, vector<10x8xbf16>, vector<8x8xf32> -> vector<8x8xf32>
    %c0_16 = arith.constant 0 : index
    %c0_17 = arith.constant 0 : index
    %c8 = arith.constant 8 : index
    %45 = vector.load %arg3[%c0_16, %c0_17, %c8] : memref<1x8x32xf32, #tpu.memory_space<vmem>>, vector<1x8x8xf32>
    %46 = vector.shape_cast %45 : vector<1x8x8xf32> to vector<8x8xf32>
    %47 = vector.shape_cast %44 : vector<8x8xf32> to vector<1x8x8xf32>
    tpu.vector_store %arg3[%c0_16, %c0_17, %c8], %47 {strides = array<i32>} : memref<1x8x32xf32, #tpu.memory_space<vmem>>, vector<1x8x8xf32>,
    %48 = vector.extract_strided_slice %4 {offsets = [0, 16], sizes = [8, 8], strides = [1, 1]} : vector<8x32xbf16> to vector<8x8xbf16>
    %49 = vector.extract_strided_slice %8 {offsets = [0, 16], sizes = [10, 8], strides = [1, 1]} : vector<10x32xbf16> to vector<10x8xbf16>
    %cst_18 = arith.constant dense<0.000000e+00> : vector<8x10xf32>
    %50 = tpu.matmul %48, %49, %cst_18 {dimension_numbers = #tpu.dot_dimension_numbers<[1], [1], [0], [0], [0, 0, 1, 0], [], []>} : vector<8x8xbf16>, vector<10x8xbf16>, vector<8x10xf32> -> vector<8x10xf32>
    %cst_19 = arith.constant dense<0xFF800000> : vector<8xf32>
    %51 = vector.multi_reduction <maximumf>, %50, %cst_19 [1] : vector<8x10xf32> to vector<8xf32>
    %52 = vector.shape_cast %51 : vector<8xf32> to vector<8x1xf32>
    %53 = vector.broadcast %52 : vector<8x1xf32> to vector<8x10xf32>
    %54 = arith.subf %50, %53 : vector<8x10xf32>
    %55 = math.exp %54 : vector<8x10xf32>
    %cst_20 = arith.constant dense<0.000000e+00> : vector<8xf32>
    %56 = vector.multi_reduction <add>, %55, %cst_20 [1] : vector<8x10xf32> to vector<8xf32>
    %57 = vector.shape_cast %56 : vector<8xf32> to vector<8x1xf32>
    %58 = tpu.reciprocal %57 {approx = true} : vector<8x1xf32> -> vector<8x1xf32>
    %59 = vector.broadcast %58 : vector<8x1xf32> to vector<8x10xf32>
    %60 = arith.mulf %55, %59 : vector<8x10xf32>
    %61 = arith.truncf %60 : vector<8x10xf32> to vector<8x10xbf16>
    %62 = vector.extract_strided_slice %9 {offsets = [0, 16], sizes = [10, 8], strides = [1, 1]} : vector<10x32xbf16> to vector<10x8xbf16>
    %cst_21 = arith.constant dense<0.000000e+00> : vector<8x8xf32>
    %63 = tpu.matmul %61, %62, %cst_21 {dimension_numbers = #tpu.dot_dimension_numbers<[1], [0], [0], [1], [0, 0, 1, 1], [], []>} : vector<8x10xbf16>, vector<10x8xbf16>, vector<8x8xf32> -> vector<8x8xf32>
    %c0_22 = arith.constant 0 : index
    %c0_23 = arith.constant 0 : index
    %c16 = arith.constant 16 : index
    %64 = vector.load %arg3[%c0_22, %c0_23, %c16] : memref<1x8x32xf32, #tpu.memory_space<vmem>>, vector<1x8x8xf32>
    %65 = vector.shape_cast %64 : vector<1x8x8xf32> to vector<8x8xf32>
    %66 = vector.shape_cast %63 : vector<8x8xf32> to vector<1x8x8xf32>
    tpu.vector_store %arg3[%c0_22, %c0_23, %c16], %66 {strides = array<i32>} : memref<1x8x32xf32, #tpu.memory_space<vmem>>, vector<1x8x8xf32>,
    %67 = vector.extract_strided_slice %4 {offsets = [0, 24], sizes = [8, 8], strides = [1, 1]} : vector<8x32xbf16> to vector<8x8xbf16>
    %68 = vector.extract_strided_slice %8 {offsets = [0, 24], sizes = [10, 8], strides = [1, 1]} : vector<10x32xbf16> to vector<10x8xbf16>
    %cst_24 = arith.constant dense<0.000000e+00> : vector<8x10xf32>
    %69 = tpu.matmul %67, %68, %cst_24 {dimension_numbers = #tpu.dot_dimension_numbers<[1], [1], [0], [0], [0, 0, 1, 0], [], []>} : vector<8x8xbf16>, vector<10x8xbf16>, vector<8x10xf32> -> vector<8x10xf32>
    %cst_25 = arith.constant dense<0xFF800000> : vector<8xf32>
    %70 = vector.multi_reduction <maximumf>, %69, %cst_25 [1] : vector<8x10xf32> to vector<8xf32>
    %71 = vector.shape_cast %70 : vector<8xf32> to vector<8x1xf32>
    %72 = vector.broadcast %71 : vector<8x1xf32> to vector<8x10xf32>
    %73 = arith.subf %69, %72 : vector<8x10xf32>
    %74 = math.exp %73 : vector<8x10xf32>
    %cst_26 = arith.constant dense<0.000000e+00> : vector<8xf32>
    %75 = vector.multi_reduction <add>, %74, %cst_26 [1] : vector<8x10xf32> to vector<8xf32>
    %76 = vector.shape_cast %75 : vector<8xf32> to vector<8x1xf32>
    %77 = tpu.reciprocal %76 {approx = true} : vector<8x1xf32> -> vector<8x1xf32>
    %78 = vector.broadcast %77 : vector<8x1xf32> to vector<8x10xf32>
    %79 = arith.mulf %74, %78 : vector<8x10xf32>
    %80 = arith.truncf %79 : vector<8x10xf32> to vector<8x10xbf16>
    %81 = vector.extract_strided_slice %9 {offsets = [0, 24], sizes = [10, 8], strides = [1, 1]} : vector<10x32xbf16> to vector<10x8xbf16>
    %cst_27 = arith.constant dense<0.000000e+00> : vector<8x8xf32>
    %82 = tpu.matmul %80, %81, %cst_27 {dimension_numbers = #tpu.dot_dimension_numbers<[1], [0], [0], [1], [0, 0, 1, 1], [], []>} : vector<8x10xbf16>, vector<10x8xbf16>, vector<8x8xf32> -> vector<8x8xf32>
    %c0_28 = arith.constant 0 : index
    %c0_29 = arith.constant 0 : index
    %c24 = arith.constant 24 : index
    %83 = vector.load %arg3[%c0_28, %c0_29, %c24] : memref<1x8x32xf32, #tpu.memory_space<vmem>>, vector<1x8x8xf32>
    %84 = vector.shape_cast %83 : vector<1x8x8xf32> to vector<8x8xf32>
    %85 = vector.shape_cast %82 : vector<8x8xf32> to vector<1x8x8xf32>
    tpu.vector_store %arg3[%c0_28, %c0_29, %c24], %85 {strides = array<i32>} : memref<1x8x32xf32, #tpu.memory_space<vmem>>, vector<1x8x8xf32>,
    return
  }
  func.func @transform_0(%arg0: i32) -> (i32, i32, i32) {
    %c0_i32 = arith.constant 0 : i32
    %c0_i32_0 = arith.constant 0 : i32
    %c0_i32_1 = arith.constant 0 : i32
    return %arg0, %c0_i32, %c0_i32_0 : i32, i32, i32
  }
  func.func @transform_1(%arg0: i32) -> (i32, i32, i32) {
    %c0_i32 = arith.constant 0 : i32
    %c0_i32_0 = arith.constant 0 : i32
    %c0_i32_1 = arith.constant 0 : i32
    return %arg0, %c0_i32, %c0_i32_0 : i32, i32, i32
  }
  func.func @transform_2(%arg0: i32) -> (i32, i32, i32) {
    %c0_i32 = arith.constant 0 : i32
    %c0_i32_0 = arith.constant 0 : i32
    %c0_i32_1 = arith.constant 0 : i32
    return %arg0, %c0_i32, %c0_i32_0 : i32, i32, i32
  }
}

module attributes {stable_mosaic.version = 11 : i64} {
  func.func @_linear_res_ln_kernel(%arg0: i32, %arg1: i32, %arg2: memref<16x512xbf16, #tpu.memory_space<vmem>>, %arg3: memref<512x32xbf16, #tpu.memory_space<vmem>>, %arg4: memref<1x32xf32, #tpu.memory_space<vmem>>, %arg5: memref<16x32xf32, #tpu.memory_space<vmem>>, %arg6: memref<1x32xf32, #tpu.memory_space<vmem>>, %arg7: memref<1x32xf32, #tpu.memory_space<vmem>>, %arg8: memref<16x32xf32, #tpu.memory_space<vmem>>) attributes {dimension_semantics = [#tpu.dimension_semantics<parallel>, #tpu.dimension_semantics<arbitrary>], iteration_bounds = array<i64: 1, 4>, scalar_prefetch = 0 : i64, scratch_operands = 0 : i64, tpu.core_type = #tpu.core_type<tc>, window_params = [{transform_indices = @transform_0, window_bounds = array<i64: 16, 512>}, {transform_indices = @transform_1, window_bounds = array<i64: 512, 32>}, {pipeline_mode = #tpu.pipeline_mode<synchronous>, transform_indices = @transform_2, window_bounds = array<i64: 1, 32>}, {transform_indices = @transform_3, window_bounds = array<i64: 16, 32>}, {pipeline_mode = #tpu.pipeline_mode<synchronous>, transform_indices = @transform_4, window_bounds = array<i64: 1, 32>}, {pipeline_mode = #tpu.pipeline_mode<synchronous>, transform_indices = @transform_5, window_bounds = array<i64: 1, 32>}, {transform_indices = @transform_6, window_bounds = array<i64: 16, 32>}]} {
    %c0_i32 = arith.constant 0 : i32
    %0 = arith.cmpi eq, %arg1, %c0_i32 : i32
    %1 = arith.extui %0 : i1 to i32
    %c0_i32_0 = arith.constant 0 : i32
    %2 = arith.cmpi ne, %1, %c0_i32_0 : i32
    scf.if %2 {
      %c0_9 = arith.constant 0 : index
      %c0_10 = arith.constant 0 : index
      %12 = vector.load %arg4[%c0_9, %c0_10] : memref<1x32xf32, #tpu.memory_space<vmem>>, vector<1x32xf32>
      %13 = vector.shape_cast %12 : vector<1x32xf32> to vector<1x32xf32>
      %14 = vector.broadcast %13 : vector<1x32xf32> to vector<16x32xf32>
      %c0_11 = arith.constant 0 : index
      %c0_12 = arith.constant 0 : index
      %15 = vector.load %arg8[%c0_11, %c0_12] : memref<16x32xf32, #tpu.memory_space<vmem>>, vector<16x32xf32>
      tpu.vector_store %arg8[%c0_11, %c0_12], %14 {strides = array<i32>} : memref<16x32xf32, #tpu.memory_space<vmem>>, vector<16x32xf32>,
    } else {
    }
    %c0 = arith.constant 0 : index
    %c0_1 = arith.constant 0 : index
    %3 = vector.load %arg8[%c0, %c0_1] : memref<16x32xf32, #tpu.memory_space<vmem>>, vector<16x32xf32>
    %c0_2 = arith.constant 0 : index
    %c0_3 = arith.constant 0 : index
    %4 = vector.load %arg2[%c0_2, %c0_3] : memref<16x512xbf16, #tpu.memory_space<vmem>>, vector<16x512xbf16>
    %c0_4 = arith.constant 0 : index
    %c0_5 = arith.constant 0 : index
    %5 = vector.load %arg3[%c0_4, %c0_5] : memref<512x32xbf16, #tpu.memory_space<vmem>>, vector<512x32xbf16>
    %cst = arith.constant dense<0.000000e+00> : vector<16x32xf32>
    %6 = tpu.matmul %4, %5, %cst {dimension_numbers = #tpu.dot_dimension_numbers<[1], [0], [0], [1], [0, 0, 1, 1], [], []>} : vector<16x512xbf16>, vector<512x32xbf16>, vector<16x32xf32> -> vector<16x32xf32>
    %7 = arith.addf %3, %6 : vector<16x32xf32>
    %c0_6 = arith.constant 0 : index
    %c0_7 = arith.constant 0 : index
    %8 = vector.load %arg8[%c0_6, %c0_7] : memref<16x32xf32, #tpu.memory_space<vmem>>, vector<16x32xf32>
    tpu.vector_store %arg8[%c0_6, %c0_7], %7 {strides = array<i32>} : memref<16x32xf32, #tpu.memory_space<vmem>>, vector<16x32xf32>,
    %c3_i32 = arith.constant 3 : i32
    %9 = arith.cmpi eq, %arg1, %c3_i32 : i32
    %10 = arith.extui %9 : i1 to i32
    %c0_i32_8 = arith.constant 0 : i32
    %11 = arith.cmpi ne, %10, %c0_i32_8 : i32
    scf.if %11 {
      %c0_9 = arith.constant 0 : index
      %c0_10 = arith.constant 0 : index
      %12 = vector.load %arg8[%c0_9, %c0_10] : memref<16x32xf32, #tpu.memory_space<vmem>>, vector<16x32xf32>
      %c0_11 = arith.constant 0 : index
      %c0_12 = arith.constant 0 : index
      %13 = vector.load %arg5[%c0_11, %c0_12] : memref<16x32xf32, #tpu.memory_space<vmem>>, vector<16x32xf32>
      %14 = arith.addf %12, %13 : vector<16x32xf32>
      %cst_13 = arith.constant dense<0.000000e+00> : vector<16xf32>
      %15 = vector.multi_reduction <add>, %14, %cst_13 [1] : vector<16x32xf32> to vector<16xf32>
      %16 = vector.shape_cast %15 : vector<16xf32> to vector<16x1xf32>
      %cst_14 = arith.constant 3.200000e+01 : f32
      %17 = vector.broadcast %cst_14 : f32 to vector<16x1xf32>
      %18 = arith.divf %16, %17 : vector<16x1xf32>
      %19 = vector.broadcast %18 : vector<16x1xf32> to vector<16x32xf32>
      %20 = arith.subf %14, %19 : vector<16x32xf32>
      %21 = arith.mulf %20, %20 : vector<16x32xf32>
      %cst_15 = arith.constant dense<0.000000e+00> : vector<16xf32>
      %22 = vector.multi_reduction <add>, %21, %cst_15 [1] : vector<16x32xf32> to vector<16xf32>
      %23 = vector.shape_cast %22 : vector<16xf32> to vector<16x1xf32>
      %cst_16 = arith.constant 3.200000e+01 : f32
      %24 = vector.broadcast %cst_16 : f32 to vector<16x1xf32>
      %25 = arith.divf %23, %24 : vector<16x1xf32>
      %26 = vector.broadcast %18 : vector<16x1xf32> to vector<16x32xf32>
      %27 = arith.subf %14, %26 : vector<16x32xf32>
      %cst_17 = arith.constant 9.99999974E-6 : f32
      %28 = vector.broadcast %cst_17 : f32 to vector<16x1xf32>
      %29 = arith.addf %25, %28 : vector<16x1xf32>
      %30 = math.rsqrt %29 : vector<16x1xf32>
      %31 = vector.broadcast %30 : vector<16x1xf32> to vector<16x32xf32>
      %32 = arith.mulf %27, %31 : vector<16x32xf32>
      %c0_18 = arith.constant 0 : index
      %c0_19 = arith.constant 0 : index
      %33 = vector.load %arg6[%c0_18, %c0_19] : memref<1x32xf32, #tpu.memory_space<vmem>>, vector<1x32xf32>
      %34 = vector.broadcast %33 : vector<1x32xf32> to vector<16x32xf32>
      %35 = arith.mulf %32, %34 : vector<16x32xf32>
      %c0_20 = arith.constant 0 : index
      %c0_21 = arith.constant 0 : index
      %36 = vector.load %arg7[%c0_20, %c0_21] : memref<1x32xf32, #tpu.memory_space<vmem>>, vector<1x32xf32>
      %37 = vector.broadcast %36 : vector<1x32xf32> to vector<16x32xf32>
      %38 = arith.addf %35, %37 : vector<16x32xf32>
      %c0_22 = arith.constant 0 : index
      %c0_23 = arith.constant 0 : index
      %39 = vector.load %arg8[%c0_22, %c0_23] : memref<16x32xf32, #tpu.memory_space<vmem>>, vector<16x32xf32>
      tpu.vector_store %arg8[%c0_22, %c0_23], %38 {strides = array<i32>} : memref<16x32xf32, #tpu.memory_space<vmem>>, vector<16x32xf32>,
    } else {
    }
    return
  }
  func.func @transform_0(%arg0: i32, %arg1: i32) -> (i32, i32) {
    %c0_i32 = arith.constant 0 : i32
    return %arg0, %arg1 : i32, i32
  }
  func.func @transform_1(%arg0: i32, %arg1: i32) -> (i32, i32) {
    %c0_i32 = arith.constant 0 : i32
    %c0_i32_0 = arith.constant 0 : i32
    return %arg1, %c0_i32 : i32, i32
  }
  func.func @transform_2(%arg0: i32, %arg1: i32) -> (i32, i32) {
    %c0_i32 = arith.constant 0 : i32
    %c0_i32_0 = arith.constant 0 : i32
    %c0_i32_1 = arith.constant 0 : i32
    return %c0_i32, %c0_i32_0 : i32, i32
  }
  func.func @transform_3(%arg0: i32, %arg1: i32) -> (i32, i32) {
    %c0_i32 = arith.constant 0 : i32
    %c0_i32_0 = arith.constant 0 : i32
    return %arg0, %c0_i32 : i32, i32
  }
  func.func @transform_4(%arg0: i32, %arg1: i32) -> (i32, i32) {
    %c0_i32 = arith.constant 0 : i32
    %c0_i32_0 = arith.constant 0 : i32
    %c0_i32_1 = arith.constant 0 : i32
    return %c0_i32, %c0_i32_0 : i32, i32
  }
  func.func @transform_5(%arg0: i32, %arg1: i32) -> (i32, i32) {
    %c0_i32 = arith.constant 0 : i32
    %c0_i32_0 = arith.constant 0 : i32
    %c0_i32_1 = arith.constant 0 : i32
    return %c0_i32, %c0_i32_0 : i32, i32
  }
  func.func @transform_6(%arg0: i32, %arg1: i32) -> (i32, i32) {
    %c0_i32 = arith.constant 0 : i32
    %c0_i32_0 = arith.constant 0 : i32
    return %arg0, %c0_i32 : i32, i32
  }
}

module attributes {stable_mosaic.version = 11 : i64} {
  func.func @_linear_kernel_acc_out(%arg0: i32, %arg1: i32, %arg2: i32, %arg3: memref<16x32xbf16, #tpu.memory_space<vmem>>, %arg4: memref<32x50xbf16, #tpu.memory_space<vmem>>, %arg5: memref<1x50xf32, #tpu.memory_space<vmem>>, %arg6: memref<16x50xf32, #tpu.memory_space<vmem>>) attributes {dimension_semantics = [#tpu.dimension_semantics<parallel>, #tpu.dimension_semantics<parallel>, #tpu.dimension_semantics<arbitrary>], iteration_bounds = array<i64: 1, 1, 1>, scalar_prefetch = 0 : i64, scratch_operands = 0 : i64, tpu.core_type = #tpu.core_type<tc>, window_params = [{transform_indices = @transform_0, window_bounds = array<i64: 16, 32>}, {transform_indices = @transform_1, window_bounds = array<i64: 32, 50>}, {transform_indices = @transform_2, window_bounds = array<i64: 1, 50>}, {transform_indices = @transform_3, window_bounds = array<i64: 16, 50>}]} {
    %c0_i32 = arith.constant 0 : i32
    %0 = arith.cmpi eq, %arg2, %c0_i32 : i32
    %1 = arith.extui %0 : i1 to i32
    %c0_i32_0 = arith.constant 0 : i32
    %2 = arith.cmpi ne, %1, %c0_i32_0 : i32
    scf.if %2 {
      %c0_8 = arith.constant 0 : index
      %c0_9 = arith.constant 0 : index
      %9 = vector.load %arg5[%c0_8, %c0_9] : memref<1x50xf32, #tpu.memory_space<vmem>>, vector<1x50xf32>
      %10 = vector.shape_cast %9 : vector<1x50xf32> to vector<1x50xf32>
      %11 = vector.broadcast %10 : vector<1x50xf32> to vector<16x50xf32>
      %c0_10 = arith.constant 0 : index
      %c0_11 = arith.constant 0 : index
      %12 = vector.load %arg6[%c0_10, %c0_11] : memref<16x50xf32, #tpu.memory_space<vmem>>, vector<16x50xf32>
      tpu.vector_store %arg6[%c0_10, %c0_11], %11 {strides = array<i32>} : memref<16x50xf32, #tpu.memory_space<vmem>>, vector<16x50xf32>,
    } else {
    }
    %c0 = arith.constant 0 : index
    %c0_1 = arith.constant 0 : index
    %3 = vector.load %arg6[%c0, %c0_1] : memref<16x50xf32, #tpu.memory_space<vmem>>, vector<16x50xf32>
    %c0_2 = arith.constant 0 : index
    %c0_3 = arith.constant 0 : index
    %4 = vector.load %arg3[%c0_2, %c0_3] : memref<16x32xbf16, #tpu.memory_space<vmem>>, vector<16x32xbf16>
    %c0_4 = arith.constant 0 : index
    %c0_5 = arith.constant 0 : index
    %5 = vector.load %arg4[%c0_4, %c0_5] : memref<32x50xbf16, #tpu.memory_space<vmem>>, vector<32x50xbf16>
    %cst = arith.constant dense<0.000000e+00> : vector<16x50xf32>
    %6 = tpu.matmul %4, %5, %cst {dimension_numbers = #tpu.dot_dimension_numbers<[1], [0], [0], [1], [0, 0, 1, 1], [], []>} : vector<16x32xbf16>, vector<32x50xbf16>, vector<16x50xf32> -> vector<16x50xf32>
    %7 = arith.addf %3, %6 : vector<16x50xf32>
    %c0_6 = arith.constant 0 : index
    %c0_7 = arith.constant 0 : index
    %8 = vector.load %arg6[%c0_6, %c0_7] : memref<16x50xf32, #tpu.memory_space<vmem>>, vector<16x50xf32>
    tpu.vector_store %arg6[%c0_6, %c0_7], %7 {strides = array<i32>} : memref<16x50xf32, #tpu.memory_space<vmem>>, vector<16x50xf32>,
    return
  }
  func.func @transform_0(%arg0: i32, %arg1: i32, %arg2: i32) -> (i32, i32) {
    %c0_i32 = arith.constant 0 : i32
    return %arg0, %arg2 : i32, i32
  }
  func.func @transform_1(%arg0: i32, %arg1: i32, %arg2: i32) -> (i32, i32) {
    %c0_i32 = arith.constant 0 : i32
    return %arg2, %arg1 : i32, i32
  }
  func.func @transform_2(%arg0: i32, %arg1: i32, %arg2: i32) -> (i32, i32) {
    %c0_i32 = arith.constant 0 : i32
    %c0_i32_0 = arith.constant 0 : i32
    return %c0_i32, %arg1 : i32, i32
  }
  func.func @transform_3(%arg0: i32, %arg1: i32, %arg2: i32) -> (i32, i32) {
    %c0_i32 = arith.constant 0 : i32
    return %arg0, %arg1 : i32, i32
  }
}

</mosaic_0001>

<bundles_post_ra>
// kernel: transformer_decoder_forward.21
= control target key start
LH: loop header
LB: loop body
LE: loop exit
PB: predicated region body
PF: predicated region fallthrough
CT: control target
= control target key end

     0   :  { %v199_v0 = vmov 0.0   ;;  %vm200_vm0 = vmmov 0   ;;  %vm35_vm1 = vcmask 261120   ;;  %s301_s1 = inlined_call_operand.vmem [shape: bf16[32,32], index: 1, kind: input, shape index: {}]   ;;  %s302_s2 = inlined_call_operand.vmem [shape: f32[1,32], index: 2, kind: input, shape index: {}]   ;;  %s303_s0 = inlined_call_operand.vmem [shape: bf16[16,32], index: 0, kind: input, shape index: {}]   ;;  %s304_s6 = inlined_call_operand.vmem [shape: f32[16,32], index: 6, kind: output, shape index: {}]   ;;  %s305_s3 = inlined_call_operand.vmem [shape: f32[16,32], index: 3, kind: input, shape index: {}]   ;;  %s306_s4 = inlined_call_operand.vmem [shape: f32[1,32], index: 4, kind: input, shape index: {}]   ;;  %s307_s5 = inlined_call_operand.vmem [shape: f32[1,32], index: 5, kind: input, shape index: {}]  }
   0x1   :  { %182 = vmatprep.subr.bf16.mxu0 %v199_v0  ;;  %v192_v1 = vld [vmem:[%s301_s1 + $0x8] sm:$0xff]   ;;  %186 = vmatprep.mubr.msk.bf16.mxu0 %vm200_vm0, %v199_v0  ;;  %v193_v2 = vld [vmem:[%s301_s1] sm:$0xff]  }
   0x2   :  { %183 = vmatpush3.bf16.msra.mxu0 %v192_v1  ;;  %v172_v3 = vld [vmem:[%s302_s2] ss:$0 sm:$0xff]  ;;  %v118_v16 = vld [vmem:[%s305_s3 + $0x8] sm:$0xff] }
   0x3   :  { %184 = vmatprep.subr.bf16.mxu0 %v199_v0  ;;  %36 = vst.msk [vmem:[%s304_s6] sm:$0xff] %vm35_vm1, %v172_v3  ;;  %37 = vst.msk [vmem:[%s304_s6 + $0x8] sm:$0xff] %vm35_vm1, %v172_v3  ;;  %v194_v4 = vld [vmem:[%s303_s0] sm:$0xff]  }
   0x4   :  { %v117_v13 = vld [vmem:[%s305_s3] sm:$0xff] }
   0x5   :  { %v177_v38 = vld [vmem:[%s306_s4] ss:$0 sm:$0xff] }
   0x6   :  { %185 = vmatpush3.bf16.msra.mxu0 %v193_v2  ;;  %v178_v40 = vld [vmem:[%s307_s5] ss:$0 sm:$0xff] }
   0x9   :  { %187 = vmatmul.mubr.msk.bf16.vlgmr.msra.gmra.mxu0 %vm35_vm1, %v194_v4 }
   0xa   :  { %v38_v5 = vld [vmem:[%s304_s6] sm:$0xff]  ;;  %v39_v9 = vld [vmem:[%s304_s6 + $0x8] sm:$0xff] }
  0xc9   :  { %v101_v6 = vpop.f32.mrf.mxu0 }
  0xca   :  { %v108_v7 = vadd.f32 %v101_v6, %v38_v5 }
  0xcb   :  { %v188_v8 = vpop.f32.mrf.mxu0 }
  0xcc   :  { %110 = vst.msk [vmem:[%s304_s6] sm:$0xff] %vm35_vm1, %v108_v7 }
  0xcd   :  { %v104_v10 = vpop.f32.mrf.mxu0 }
  0xce   :  { %v109_v11 = vadd.f32 %v104_v10, %v39_v9 }
  0xcf   :  { %v189_v12 = vpop.f32.mrf.mxu0 }
  0xd0   :  { %111 = vst.msk [vmem:[%s304_s6 + $0x8] sm:$0xff] %vm35_vm1, %v109_v11 }
  0xd3   :  { %v115_v14 = vld [vmem:[%s304_s6] sm:$0xff] }
  0xd4   :  { %v119_v15 = vadd.f32 %v117_v13, %v115_v14 }
  0xd6   :  { %v121_v17 = vsel %vm35_vm1, %v119_v15, 0.0 }
  0xd7   :  { %122 = vadd.xlane.f32.xlu0 %v121_v17  ;;  %v116_v18 = vld [vmem:[%s304_s6 + $0x8] sm:$0xff] }
  0xd8   :  { %v120_v19 = vadd.f32 %v118_v16, %v116_v18 }
  0xda   :  { %v124_v20 = vsel %vm35_vm1, %v120_v19, 0.0 }
  0xdb   :  { %125 = vadd.xlane.f32.xlu0 %v124_v20 }
 0x160   :  { %v123_v21 = vpop.xlane.xlu0 %122 }
 0x161   :  { %v128_v22 = vmul.f32 0.03125, %v123_v21 }
 0x163   :  { %v130_v23 = vsub.f32 %v119_v15, %v128_v22 }
 0x164   :  { %v126_v24 = vpop.xlane.xlu0 %125 }
 0x165   :  { %v129_v25 = vmul.f32 0.03125, %v126_v24  ;;  %v132_v26 = vmul.f32 %v130_v23, %v130_v23 }
 0x167   :  { %v131_v27 = vsub.f32 %v120_v19, %v129_v25  ;;  %v134_v28 = vsel %vm35_vm1, %v132_v26, 0.0 }
 0x168   :  { %135 = vadd.xlane.f32.xlu1 %v134_v28 }
 0x169   :  { %v133_v29 = vmul.f32 %v131_v27, %v131_v27 }
 0x16b   :  { %v137_v30 = vsel %vm35_vm1, %v133_v29, 0.0 }
 0x16c   :  { %138 = vadd.xlane.f32.xlu1 %v137_v30 }
 0x1f1   :  { %v136_v31 = vpop.xlane.xlu1 %135 }
 0x1f2   :  { %v140_v32 = vmul.f32 0.03125, %v136_v31 }
 0x1f4   :  { %v142_v33 = vadd.f32 1e-05, %v140_v32 }
 0x1f5   :  { %v139_v34 = vpop.xlane.xlu1 %138 }
 0x1f6   :  { %195 = vrsqrt.f32 %v142_v33  ;;  %v141_v35 = vmul.f32 0.03125, %v139_v34 }
 0x1f8   :  { %v143_v36 = vadd.f32 1e-05, %v141_v35 }
 0x1fa   :  { %197 = vrsqrt.f32 %v143_v36 }
 0x203   :  { %v196_v37 = vpop.eup %195 }
 0x204   :  { %v146_v39 = vmul.f32 %v196_v37, %v130_v23 }
 0x206   :  { %v155_v41 = vmul.f32 %v177_v38, %v146_v39 }
 0x207   :  { %v198_v42 = vpop.eup %197 }
 0x208   :  { %v164_v43 = vadd.f32 %v178_v40, %v155_v41  ;;  %v147_v44 = vmul.f32 %v198_v42, %v131_v27 }
 0x20a   :  { %166 = vst.msk [vmem:[%s304_s6] sm:$0xff] %vm35_vm1, %v164_v43  ;;  %v156_v45 = vmul.f32 %v177_v38, %v147_v44 }
 0x20c   :  { %v165_v46 = vadd.f32 %v178_v40, %v156_v45 }
 0x20e   :  { %167 = vst.msk [vmem:[%s304_s6 + $0x8] sm:$0xff] %vm35_vm1, %v165_v46 }

// kernel: transformer_decoder_forward.19
= control target key start
LH: loop header
LB: loop body
LE: loop exit
PB: predicated region body
PF: predicated region fallthrough
CT: control target
= control target key end

     0   :  { %v129_v0 = vmov 0.0   ;;  %vm130_vm0 = vmmov 0   ;;  %vm26_vm1 = vcmask 785408   ;;  %vm54_vm2 = vcmask 261120   ;;  %s185_s1 = inlined_call_operand.vmem [shape: bf16[32,96], index: 1, kind: input, shape index: {}]   ;;  %s186_s2 = inlined_call_operand.vmem [shape: f32[1,96], index: 2, kind: input, shape index: {}]   ;;  %s187_s0 = inlined_call_operand.vmem [shape: bf16[16,32], index: 0, kind: input, shape index: {}]   ;;  %s188_s3 = inlined_call_operand.vmem [shape: f32[16,96], index: 3, kind: output, shape index: {}]  }
   0x1   :  { %116 = vmatprep.subr.bf16.mxu0 %v129_v0  ;;  %v126_v1 = vld [vmem:[%s185_s1 + $0x8] sm:$0xff]   ;;  %120 = vmatprep.mubr.msk.bf16.mxu0 %vm130_vm0, %v129_v0  ;;  %v127_v2 = vld [vmem:[%s185_s1] sm:$0xff]  }
   0x2   :  { %117 = vmatpush3.bf16.msra.mxu0 %v126_v1  ;;  %v108_v3 = vld [vmem:[%s186_s2] ss:$0 sm:$0xff] }
   0x3   :  { %118 = vmatprep.subr.bf16.mxu0 %v129_v0  ;;  %27 = vst.msk [vmem:[%s188_s3] sm:$0xff] %vm26_vm1, %v108_v3  ;;  %28 = vst.msk [vmem:[%s188_s3 + $0x8] sm:$0xff] %vm26_vm1, %v108_v3  ;;  %v128_v4 = vld [vmem:[%s187_s0] sm:$0xff]  }
   0x6   :  { %119 = vmatpush3.bf16.msra.mxu0 %v127_v2 }
   0x9   :  { %121 = vmatmul.mubr.msk.bf16.vlgmr.msra.gmra.mxu0 %vm54_vm2, %v128_v4 }
   0xa   :  { %v29_v5 = vld [vmem:[%s188_s3] sm:$0xff]  ;;  %v30_v9 = vld [vmem:[%s188_s3 + $0x8] sm:$0xff] }
  0xc9   :  { %v92_v6 = vpop.f32.mrf.mxu0 }
  0xca   :  { %v99_v7 = vadd.f32 %v92_v6, %v29_v5 }
  0xcb   :  { %v122_v8 = vpop.f32.mrf.mxu0 }
  0xcc   :  { %102 = vst.msk [vmem:[%s188_s3] sm:$0xff] %vm26_vm1, %v99_v7 }
  0xcd   :  { %v95_v10 = vpop.f32.mrf.mxu0 }
  0xce   :  { %v100_v11 = vadd.f32 %v95_v10, %v30_v9 }
  0xcf   :  { %v123_v12 = vpop.f32.mrf.mxu0 }
  0xd0   :  { %103 = vst.msk [vmem:[%s188_s3 + $0x8] sm:$0xff] %vm26_vm1, %v100_v11 }

// kernel: transformer_decoder_forward.22
= control target key start
LH: loop header
LB: loop body
LE: loop exit
PB: predicated region body
PF: predicated region fallthrough
CT: control target
= control target key end

     0   :  { %v128_v0 = vmov 0.0   ;;  %vm129_vm0 = vmmov 0   ;;  %vm26_vm1 = vcmask 261120   ;;  %s185_s1 = inlined_call_operand.vmem [shape: bf16[32,32], index: 1, kind: input, shape index: {}]   ;;  %s186_s2 = inlined_call_operand.vmem [shape: f32[1,32], index: 2, kind: input, shape index: {}]   ;;  %s187_s0 = inlined_call_operand.vmem [shape: bf16[16,32], index: 0, kind: input, shape index: {}]   ;;  %s188_s3 = inlined_call_operand.vmem [shape: f32[16,32], index: 3, kind: output, shape index: {}]  }
   0x1   :  { %115 = vmatprep.subr.bf16.mxu0 %v128_v0  ;;  %v125_v1 = vld [vmem:[%s185_s1 + $0x8] sm:$0xff]   ;;  %119 = vmatprep.mubr.msk.bf16.mxu0 %vm129_vm0, %v128_v0  ;;  %v126_v2 = vld [vmem:[%s185_s1] sm:$0xff]  }
   0x2   :  { %116 = vmatpush3.bf16.msra.mxu0 %v125_v1  ;;  %v107_v3 = vld [vmem:[%s186_s2] ss:$0 sm:$0xff] }
   0x3   :  { %117 = vmatprep.subr.bf16.mxu0 %v128_v0  ;;  %27 = vst.msk [vmem:[%s188_s3] sm:$0xff] %vm26_vm1, %v107_v3  ;;  %28 = vst.msk [vmem:[%s188_s3 + $0x8] sm:$0xff] %vm26_vm1, %v107_v3  ;;  %v127_v4 = vld [vmem:[%s187_s0] sm:$0xff]  }
   0x6   :  { %118 = vmatpush3.bf16.msra.mxu0 %v126_v2 }
   0x9   :  { %120 = vmatmul.mubr.msk.bf16.vlgmr.msra.gmra.mxu0 %vm26_vm1, %v127_v4 }
   0xa   :  { %v29_v5 = vld [vmem:[%s188_s3] sm:$0xff]  ;;  %v30_v9 = vld [vmem:[%s188_s3 + $0x8] sm:$0xff] }
  0xc9   :  { %v92_v6 = vpop.f32.mrf.mxu0 }
  0xca   :  { %v99_v7 = vadd.f32 %v92_v6, %v29_v5 }
  0xcb   :  { %v121_v8 = vpop.f32.mrf.mxu0 }
  0xcc   :  { %101 = vst.msk [vmem:[%s188_s3] sm:$0xff] %vm26_vm1, %v99_v7 }
  0xcd   :  { %v95_v10 = vpop.f32.mrf.mxu0 }
  0xce   :  { %v100_v11 = vadd.f32 %v95_v10, %v30_v9 }
  0xcf   :  { %v122_v12 = vpop.f32.mrf.mxu0 }
  0xd0   :  { %102 = vst.msk [vmem:[%s188_s3 + $0x8] sm:$0xff] %vm26_vm1, %v100_v11 }

// kernel: transformer_decoder_forward.20
= control target key start
LH: loop header
LB: loop body
LE: loop exit
PB: predicated region body
PF: predicated region fallthrough
CT: control target
= control target key end

     0   :  { %s819_s9 = smov 0   ;;  %s918_s0 = inlined_call_operand.vmem [shape: f32[2,8,96], index: 0, kind: input, shape index: {}]   ;;  %s919_s1 = inlined_call_operand.vmem [shape: f32[8,8], index: 1, kind: input, shape index: {}]   ;;  %s920_s2 = inlined_call_operand.vmem [shape: f32[2,8,32], index: 2, kind: output, shape index: {}]  }
   0x1 LB: > { %s659_s10 = sadd.s32 4294967295, %s786_s9   ;;  %p663_p0 = scmp.ge.s32.totalorder %s786_s9, 1  ;;  %s786_s9 = sphi %s819_s9, %s12_s9  }
   0x2   : > { %p111_p1 = scmp.lt.s32.totalorder %s786_s9, 3 }
   0x4   : > { %p112_p2 = pnand %p663_p0, %p111_p1 }
   0x5   : > { %p131_p3 = scmp.lt.s32.totalorder (!%p112_p2), %s659_s10, 1  ;;  %s790_s15 = smov (!%p112_p2), 96  }
   0x6   : > { %115 = sbr.rel (%p112_p2) target bundleno = 1536 (0x600), region = 28  ;;  %s791_s16 = smov (!%p112_p2), 64  }
   0x7   : > { %s792_s17 = smov (!%p112_p2), 88   ;;  %s793_s20 = smov (!%p112_p2), 72  }
   0x8   : > { %s794_s21 = smov (!%p112_p2), 120   ;;  %s795_s22 = smov (!%p112_p2), 80  }
   0x9   : > { %s796_s23 = smov (!%p112_p2), 112   ;;  %s797_s24 = smov (!%p112_p2), 104  }
   0xa   : > { %s798_s28 = smov (!%p112_p2), 56   ;;  %s799_s29 = smov (!%p112_p2), 48  }
   0xb   : > { %v788_v0 = vmov 0.0   ;;  %vm789_vm0 = vmmov 0   ;;  %s922_s10 = smov (!%p131_p3, %s659_s10), 1  ;;  %vm148_vm1 = vcmask 64512   ;;  %v855_v6 = vld [vmem:[%s919_s1] sm:$0xff]  ;;  %vm212_vm2 = vcmask 1043456  }
   0xc   : > { %692 = vmatprep.subr.bf16.mxu0 %v788_v0  ;;  %694 = vmatprep.mubr.msk.bf16.mxu0 %vm789_vm0, %v788_v0  ;;  %s664_s11 = sshll.u32 %s922_s10, 3  ;;  %s800_s30 = smov 40   ;;  %vm372_vm3 = vcmask 130112   ;;  %vm488_vm4 = vcmask 195712   ;;  %vm604_vm5 = vcmask 261312  }
   0xd   : > { %698 = vmatprep.subr.bf16.mxu1 %v788_v0  ;;  %700 = vmatprep.mubr.msk.bf16.mxu1 %vm789_vm0, %v788_v0  ;;  %s134_s14 = scalar_lea.vmem %s918_s0, %s664_s11  ;;  %s884_s27 = scalar_lea.vmem %s920_s2, %s664_s11 }
   0xe   : > { %v141_v1 = vld [vmem:[%s134_s14] sm:$0xff]  ;;  %s801_s3 = smov 8   ;;  %s802_s4 = smov 16  }
   0xf   : > { %v841_v2 = vpack.c.bf16 %v141_v1, %v141_v1  ;;  %s803_s5 = smov 24  }
  0x11   : > { %146 = vrot.lane.b32.xlu0 %v841_v2, %s790_s15  ;;  %v143_v5 = vmul.bf16 1052065461, %v841_v2  ;;  %207 = vrot.lane.b32.xlu1 %v841_v2, %s791_s16 }
  0x15   : > { %260 = vrot.lane.b32.xlu1 %v841_v2, %s792_s17 }
  0x83   : > { %v147_v3 = vpop.permute.xlu0 %146  ;;  %v208_v13 = vpop.permute.xlu1 %207 }
  0x84   : > { %v153_v4 = vsel %vm148_vm1, %v147_v3, 0  ;;  %v214_v14 = vsel %vm212_vm2, %v208_v13, 0 }
  0x85   : > { %693 = vmatpush3.bf16.xpose.msra.mxu0 %v153_v4  ;;  %699 = vmatpush3.bf16.msra.mxu1 %v214_v14 }
  0x86   : > { %710 = vmatprep.subr.bf16.mxu0 %v788_v0  ;;  %704 = vmatprep.subr.bf16.mxu1 %v788_v0 }
  0x87   : > { %v261_v20 = vpop.permute.xlu1 %260 }
  0x88   : > { %v266_v26 = vsel %vm148_vm1, %v261_v20, 0 }
  0x8c   : > { %695 = vmatmul.mubr.msk.bf16.vlgmr.msra.gmra.mxu0 %vm148_vm1, %v143_v5 }
  0x8d   : > { %712 = vmatprep.mubr.msk.bf16.mxu0 %vm789_vm0, %v788_v0 }
 0x14c   : > { %v189_v7 = vpop.f32.mrf.mxu0 }
 0x14d   : > { %v190_v8 = vadd.f32 %v189_v7, %v855_v6 }
 0x14e   : > { %v696_v9 = vpop.f32.mrf.mxu0 }
 0x14f   : > { %v195_v10 = vsel %vm148_vm1, %v190_v8, -inf }
 0x150   : > { %196 = vmax.xlane.f32.xlu0 %v195_v10  ;;  %v192_v11 = vpop.f32.mrf.mxu0 }
 0x152   : > { %v697_v12 = vpop.f32.mrf.mxu0 }
 0x166   : > { %492 = vrot.lane.b32.xlu0 %v841_v2, %s793_s20 }
 0x1d9   : > { %v197_v15 = vpop.xlane.xlu0 %196 }
 0x1da   : > { %v198_v16 = vsub.f32 %v190_v8, %v197_v15 }
 0x1dc   : > { %v199_v17 = vmul.f32 1.442695, %v198_v16 }
 0x1dd   : > { %v493_v29 = vpop.permute.xlu0 %492 }
 0x1de   : > { %764 = vpow2.f32 %v199_v17  ;;  %v498_v31 = vsel %vm148_vm1, %v493_v29, 0 }
 0x1eb   : > { %v765_v18 = vpop.eup %764 }
 0x1ec   : > { %v201_v19 = vsel %vm148_vm1, %v765_v18, 0.0 }
 0x1ed   : > { %202 = vadd.xlane.f32.xlu1 %v201_v19 }
 0x1fe   : > { %258 = vrot.lane.b32.xlu1 %v143_v5, %s794_s21 }
 0x202   : > { %376 = vrot.lane.b32.xlu1 %v841_v2, %s795_s22 }
 0x206   : > { %374 = vrot.lane.b32.xlu1 %v143_v5, %s796_s23 }
 0x20a   : > { %490 = vrot.lane.b32.xlu1 %v143_v5, %s797_s24 }
 0x276   : > { %v203_v21 = vpop.xlane.xlu1 %202 }
 0x277   : > { %766 = vrcp.f32 %v203_v21 }
 0x27a   : > { %v259_v24 = vpop.permute.xlu1 %258 }
 0x27e   : > { %v377_v27 = vpop.permute.xlu1 %376 }
 0x27f   : > { %v382_v28 = vsel %vm148_vm1, %v377_v27, 0 }
 0x282   : > { %v375_v30 = vpop.permute.xlu1 %374 }
 0x284   : > { %v767_v22 = vpop.eup %766 }
 0x285   : > { %v205_v23 = vmul.f32 %v767_v22, %v765_v18 }
 0x286   : > { %v491_v32 = vpop.permute.xlu1 %490 }
 0x287   : > { %v206_v25 = vpack.c.bf16 %v205_v23, %v205_v23 }
 0x289   : > { %701 = vmatmul.mubr.msk.bf16.vlgmr.msra.gmra.mxu1 %vm148_vm1, %v206_v25 }
 0x28a   : > { %705 = vmatpush3.bf16.xpose.msra.mxu1 %v266_v26  ;;  %706 = vmatprep.mubr.msk.bf16.mxu1 %vm789_vm0, %v788_v0 }
 0x28b   : > { %716 = vmatprep.subr.bf16.mxu1 %v788_v0 }
 0x291   : > { %707 = vmatmul.mubr.msk.bf16.vlgmr.msra.gmra.mxu1 %vm148_vm1, %v259_v24 }
 0x292   : > { %717 = vmatpush3.bf16.xpose.msra.mxu1 %v382_v28  ;;  %718 = vmatprep.mubr.msk.bf16.mxu1 %vm789_vm0, %v788_v0 }
 0x293   : > { %728 = vmatprep.subr.bf16.mxu1 %v788_v0 }
 0x299   : > { %719 = vmatmul.mubr.msk.bf16.vlgmr.msra.gmra.mxu1 %vm148_vm1, %v375_v30 }
 0x29a   : > { %729 = vmatpush3.bf16.xpose.msra.mxu1 %v498_v31  ;;  %730 = vmatprep.mubr.msk.bf16.mxu1 %vm789_vm0, %v788_v0 }
 0x2a1   : > { %731 = vmatmul.mubr.msk.bf16.vlgmr.msra.gmra.mxu1 %vm148_vm1, %v491_v32 }
 0x349   : > { %v250_v33 = vpop.f32.mrf.mxu1 }
 0x34a   : > { %256 = vst.msk [vmem:[%s884_s27] sm:$0xff] %vm148_vm1, %v250_v33 }
 0x34b   : > { %v702_v34 = vpop.f32.mrf.mxu1 }
 0x34d   : > { %v253_v35 = vpop.f32.mrf.mxu1 }
 0x34f   : > { %v703_v36 = vpop.f32.mrf.mxu1 }
 0x351   : > { %v302_v37 = vpop.f32.mrf.mxu1 }
 0x352   : > { %v303_v38 = vadd.f32 %v302_v37, %v855_v6 }
 0x353   : > { %v708_v39 = vpop.f32.mrf.mxu1 }
 0x354   : > { %v308_v40 = vsel %vm148_vm1, %v303_v38, -inf }
 0x355   : > { %309 = vmax.xlane.f32.xlu1 %v308_v40  ;;  %v305_v41 = vpop.f32.mrf.mxu1 }
 0x357   : > { %v709_v42 = vpop.f32.mrf.mxu1 }
 0x359   : > { %v418_v43 = vpop.f32.mrf.mxu1 }
 0x35a   : > { %v419_v44 = vadd.f32 %v418_v43, %v855_v6 }
 0x35b   : > { %v720_v45 = vpop.f32.mrf.mxu1 }
 0x35c   : > { %v424_v46 = vsel %vm148_vm1, %v419_v44, -inf }
 0x35d   : > { %425 = vmax.xlane.f32.xlu0 %v424_v46  ;;  %v421_v47 = vpop.f32.mrf.mxu1 }
 0x35f   : > { %v721_v48 = vpop.f32.mrf.mxu1 }
 0x361   : > { %v534_v49 = vpop.f32.mrf.mxu1 }
 0x362   : > { %v535_v50 = vadd.f32 %v534_v49, %v855_v6 }
 0x363   : > { %v732_v51 = vpop.f32.mrf.mxu1 }
 0x364   : > { %v540_v52 = vsel %vm148_vm1, %v535_v50, -inf }
 0x365   : > { %541 = vmax.xlane.f32.xlu1 %v540_v52  ;;  %v537_v53 = vpop.f32.mrf.mxu1 }
 0x367   : > { %v733_v54 = vpop.f32.mrf.mxu1 }
 0x3de   : > { %v310_v55 = vpop.xlane.xlu1 %309 }
 0x3df   : > { %v311_v56 = vsub.f32 %v303_v38, %v310_v55 }
 0x3e1   : > { %v312_v57 = vmul.f32 1.442695, %v311_v56 }
 0x3e3   : > { %768 = vpow2.f32 %v312_v57 }
 0x3e6   : > { %v426_v3 = vpop.xlane.xlu0 %425 }
 0x3e7   : > { %v427_v4 = vsub.f32 %v419_v44, %v426_v3 }
 0x3e9   : > { %v428_v5 = vmul.f32 1.442695, %v427_v4 }
 0x3ee   : > { %v542_v58 = vpop.xlane.xlu1 %541 }
 0x3ef   : > { %v543_v59 = vsub.f32 %v535_v50, %v542_v58 }
 0x3f0   : > { %v769_v60 = vpop.eup %768 }
 0x3f1   : > { %v544_v61 = vmul.f32 1.442695, %v543_v59  ;;  %v314_v62 = vsel %vm148_vm1, %v769_v60, 0.0 }
 0x3f2   : > { %315 = vadd.xlane.f32.xlu1 %v314_v62 }
 0x3f3   : > { %770 = vpow2.f32 %v544_v61 }
 0x3f4   : > { %772 = vpow2.f32 %v428_v5 }
 0x400   : > { %v771_v63 = vpop.eup %770 }
 0x401   : > { %v546_v1 = vsel %vm148_vm1, %v771_v63, 0.0  ;;  %v773_v6 = vpop.eup %772 }
 0x402   : > { %547 = vadd.xlane.f32.xlu0 %v546_v1  ;;  %v430_v7 = vsel %vm148_vm1, %v773_v6, 0.0 }
 0x403   : > { %320 = vrot.lane.b32.xlu1 %v841_v2, %s798_s28 }
 0x418   : > { %436 = vrot.lane.b32.xlu0 %v841_v2, %s799_s29 }
 0x427   : > { %431 = vadd.xlane.f32.xlu1 %v430_v7 }
 0x438   : > { %552 = vrot.lane.b32.xlu1 %v841_v2, %s800_s30 }
 0x47b   : > { %v316_v8 = vpop.xlane.xlu1 %315 }
 0x47c   : > { %774 = vrcp.f32 %v316_v8 }
 0x47f   : > { %v321_v9 = vpop.permute.xlu1 %320 }
 0x480   : > { %v326_v10 = vsel %vm212_vm2, %v321_v9, 0 }
 0x481   : > { %711 = vmatpush3.bf16.msra.mxu0 %v326_v10 }
 0x482   : > { %722 = vmatprep.subr.bf16.mxu0 %v788_v0 }
 0x489   : > { %v775_v11 = vpop.eup %774 }
 0x48a   : > { %v318_v12 = vmul.f32 %v775_v11, %v769_v60 }
 0x48b   : > { %v548_v13 = vpop.xlane.xlu0 %547 }
 0x48c   : > { %v319_v14 = vpack.c.bf16 %v318_v12, %v318_v12 }
 0x48e   : > { %713 = vmatmul.mubr.msk.bf16.vlgmr.msra.gmra.mxu0 %vm148_vm1, %v319_v14 }
 0x48f   : > { %v437_v15 = vpop.permute.xlu0 %436  ;;  %724 = vmatprep.mubr.msk.bf16.mxu0 %vm789_vm0, %v788_v0 }
 0x490   : > { %v442_v2 = vsel %vm212_vm2, %v437_v15, 0 }
 0x491   : > { %723 = vmatpush3.bf16.msra.mxu0 %v442_v2 }
 0x492   : > { %734 = vmatprep.subr.bf16.mxu0 %v788_v0 }
 0x4b0   : > { %v432_v16 = vpop.xlane.xlu1 %431 }
 0x4b1   : > { %776 = vrcp.f32 %v432_v16 }
 0x4b2   : > { %778 = vrcp.f32 %v548_v13 }
 0x4b4   : > { %v553_v18 = vpop.permute.xlu1 %552 }
 0x4b5   : > { %v558_v20 = vsel %vm212_vm2, %v553_v18, 0 }
 0x4be   : > { %v777_v17 = vpop.eup %776 }
 0x4bf   : > { %v434_v19 = vmul.f32 %v777_v17, %v773_v6  ;;  %v779_v22 = vpop.eup %778 }
 0x4c0   : > { %v550_v23 = vmul.f32 %v779_v22, %v771_v63 }
 0x4c1   : > { %v435_v21 = vpack.c.bf16 %v434_v19, %v434_v19 }
 0x4c2   : > { %v551_v24 = vpack.c.bf16 %v550_v23, %v550_v23 }
 0x4c3   : > { %725 = vmatmul.mubr.msk.bf16.vlgmr.msra.gmra.mxu0 %vm148_vm1, %v435_v21 }
 0x4c4   : > { %735 = vmatpush3.bf16.msra.mxu0 %v558_v20  ;;  %736 = vmatprep.mubr.msk.bf16.mxu0 %vm789_vm0, %v788_v0 }
 0x4cb   : > { %737 = vmatmul.mubr.msk.bf16.vlgmr.msra.gmra.mxu0 %vm148_vm1, %v551_v24 }
 0x54e   : > { %v362_v25 = vpop.f32.mrf.mxu0 }
 0x54f   : > { %369 = vrot.lane.b32.xlu1 %v362_v25, %s801_s3 }
 0x550   : > { %v714_v26 = vpop.f32.mrf.mxu0 }
 0x552   : > { %v365_v27 = vpop.f32.mrf.mxu0 }
 0x554   : > { %v715_v28 = vpop.f32.mrf.mxu0 }
 0x583   : > { %v478_v29 = vpop.f32.mrf.mxu0 }
 0x584   : > { %485 = vrot.lane.b32.xlu0 %v478_v29, %s802_s4 }
 0x585   : > { %v726_v30 = vpop.f32.mrf.mxu0 }
 0x587   : > { %v481_v31 = vpop.f32.mrf.mxu0 }
 0x589   : > { %v727_v32 = vpop.f32.mrf.mxu0 }
 0x58b   : > { %v594_v0 = vpop.f32.mrf.mxu0 }
 0x58c   : > { %601 = vrot.lane.b32.xlu1 %v594_v0, %s803_s5 }
 0x58d   : > { %v738_v33 = vpop.f32.mrf.mxu0 }
 0x58f   : > { %v597_v34 = vpop.f32.mrf.mxu0 }
 0x591   : > { %v739_v35 = vpop.f32.mrf.mxu0 }
 0x5c1   : > { %v370_v36 = vpop.permute.xlu1 %369 }
 0x5c2   : > { %373 = vst.msk [vmem:[%s884_s27] sm:$0xff] %vm372_vm3, %v370_v36 }
 0x5f6   : > { %v486_v37 = vpop.permute.xlu0 %485 }
 0x5f7   : > { %489 = vst.msk [vmem:[%s884_s27] sm:$0xff] %vm488_vm4, %v486_v37 }
 0x5fe   : > { %v602_v38 = vpop.permute.xlu1 %601 }
 0x5ff   : > { %605 = vst.msk [vmem:[%s884_s27] sm:$0xff] %vm604_vm5, %v602_v38 }
 0x600 PF: > { %s12_s9 = sadd.s32 1, %s786_s9  }
 0x601   : > { %p9_p4 = scmp.ge.s32.totalorder %s12_s9, 4  }
 0x603   :  { %11 = sbr.rel (!%p9_p4) target bundleno = 1 (0x1), region = 58 }

// kernel: transformer_decoder_forward.23
= control target key start
LH: loop header
LB: loop body
LE: loop exit
PB: predicated region body
PF: predicated region fallthrough
CT: control target
= control target key end

     0   :  { %vm61_vm0 = vcmask 261120   ;;  %vm29_vm1 = vcmask 519168   ;;  %vm26_vm2 = vcmask 523264   ;;  %s215_s1 = inlined_call_operand.vmem [shape: bf16[32,64], index: 1, kind: input, shape index: {}]   ;;  %s216_s0 = inlined_call_operand.vmem [shape: bf16[20,32], index: 0, kind: input, shape index: {}]   ;;  %s217_s2 = inlined_call_operand.vmem [shape: f32[1,64], index: 2, kind: input, shape index: {}]   ;;  %s218_s3 = inlined_call_operand.vmem [shape: f32[20,64], index: 3, kind: output, shape index: {}]  }
   0x1   :  { %v147_v0 = vld [vmem:[%s215_s1 + $0x8] sm:$0xff]   ;;  %v148_v1 = vld [vmem:[%s215_s1] sm:$0xff]  }
   0x2   :  { %139 = vmatprep.subr.bf16.mxu0 %v147_v0  ;;  %v149_v2 = vld [vmem:[%s216_s0] sm:$0xff]   ;;  %v150_v4 = vld [vmem:[%s216_s0 + $0x8] ss:$0 sps:$4 sm:$0x33]  }
   0x3   :  { %140 = vmatpush3.bf16.msra.mxu0 %v147_v0  ;;  %v128_v3 = vld [vmem:[%s217_s2] ss:$0 sm:$0xff]  ;;  %143 = vmatprep.mubr.msk.bf16.mxu0 %vm61_vm0, %v149_v2 }
   0x4   :  { %141 = vmatprep.subr.bf16.mxu0 %v148_v1  ;;  %30 = vst.msk [vmem:[%s218_s3 + $0x10] sm:$0xf] %vm29_vm1, %v128_v3 }
   0x5   :  { %27 = vst.msk [vmem:[%s218_s3] sm:$0xff] %vm26_vm2, %v128_v3  ;;  %28 = vst.msk [vmem:[%s218_s3 + $0x8] sm:$0xff] %vm26_vm2, %v128_v3 }
   0x7   :  { %142 = vmatpush3.bf16.msra.mxu0 %v148_v1 }
   0xa   :  { %144 = vmatmul.mubr.msk.bf16.vlgmr.msra.gmra.mxu0 %vm61_vm0, %v150_v4 }
   0xb   :  { %v33_v5 = vld [vmem:[%s218_s3 + $0x10] sm:$0xf] }
   0xc   :  { %v31_v7 = vld [vmem:[%s218_s3] sm:$0xff]  ;;  %v32_v12 = vld [vmem:[%s218_s3 + $0x8] sm:$0xff] }
  0xca   :  { %v145_v6 = vpop.f32.mrf.mxu0 }
  0xcb   :  { %v118_v8 = vadd.f32 %v145_v6, %v33_v5 }
  0xcc   :  { %v102_v9 = vpop.f32.mrf.mxu0 }
  0xcd   :  { %123 = vst.msk [vmem:[%s218_s3 + $0x10] sm:$0xf] %vm29_vm1, %v118_v8  ;;  %v116_v10 = vadd.f32 %v102_v9, %v31_v7 }
  0xce   :  { %v146_v11 = vpop.f32.mrf.mxu0 }
  0xcf   :  { %120 = vst.msk [vmem:[%s218_s3] sm:$0xff] %vm26_vm2, %v116_v10 }
  0xd0   :  { %v105_v13 = vpop.f32.mrf.mxu0 }
  0xd1   :  { %v117_v14 = vadd.f32 %v105_v13, %v32_v12 }
  0xd3   :  { %121 = vst.msk [vmem:[%s218_s3 + $0x8] sm:$0xff] %vm26_vm2, %v117_v14 }

// kernel: transformer_decoder_forward.26
= control target key start
LH: loop header
LB: loop body
LE: loop exit
PB: predicated region body
PF: predicated region fallthrough
CT: control target
= control target key end

     0   :  { %s802_s12 = smov 0   ;;  %s804_s13 = smov 0   ;;  %s903_s0 = inlined_call_operand.vmem [shape: bf16[16,32], index: 0, kind: input, shape index: {}]   ;;  %s904_s1 = inlined_call_operand.vmem [shape: bf16[32,2048], index: 1, kind: input, shape index: {}]   ;;  %s905_s2 = inlined_call_operand.vmem [shape: f32[1,2048], index: 2, kind: input, shape index: {}]   ;;  %s906_s3 = inlined_call_operand.vmem [shape: f32[16,2048], index: 3, kind: output, shape index: {}]  }
   0x1   :  { %s806_s14 = smov 0   ;;  %s808_s15 = smov 0  }
   0x2   :  { %s810_s16 = smov 0  }
   0x3 LB: > { %s28_s17 = sadd.s32 1, %s775_s15  ;;  %s657_s18 = sadd.s32 4294967295, %s779_s16   ;;  %s779_s16 = sphi %s810_s16, %s13_s16   ;;  %s775_s15 = sphi %s808_s15, %s911_s15   ;;  %s771_s14 = sphi %s806_s14, %s910_s14   ;;  %s767_s13 = sphi %s804_s13, %s909_s13   ;;  %s763_s12 = sphi %s802_s12, %s908_s12  }
   0x4   : > { %p30_p0 = scmp.ge.s32.totalorder %s28_s17, 4  ;;  %p76_p1 = scmp.ne.s32.totalorder %s767_s13, %s763_s12 }
   0x5   : > { %p77_p2 = scmp.eq.s32.totalorder %s779_s16, 0  ;;  %p134_p4 = scmp.eq.s32.totalorder %s657_s18, 3 }
   0x6   : > { %s913_s17 = smov (%p30_p0, %s28_s17), 0  ;;  %s69_s20 = sadd.s32 1, %s767_s13 }
   0x7   : > { %p78_p3 = por %p77_p2, %p76_p1  ;;  %s65_s19 = ssub.s32 %s775_s15, %s913_s17 }
   0x8   : > { %p67_p5 = scmp.eq.s32.totalorder %s65_s19, 0  ;;  %p837_p6 = por %p134_p4, %p76_p1 }
   0x9   : > { %p661_p7 = scmp.ge.s32.totalorder %s779_s16, 4 }
   0xa   : > { %s842_s22 = scalar_select %p67_p5, %s767_s13, %s69_s20  }
   0xb   : > { %168 = sbr.rel (%p661_p7) target bundleno = 24 (0x18), region = 20 }
  0x10   : > { %171 = sbr.rel (!%p78_p3) target bundleno = 24 (0x18), region = 24  ;;  %s173_s23 = sand.u32 (%p78_p3), 1, %s767_s13  }
  0x11   : > { %s685_s24 = sshll.u32 (%p78_p3), %s775_s15, 4  ;;  %s662_s25 = sshll.u32 (%p78_p3), %s173_s23, 6 }
  0x12   : > { %s181_s28 = scalar_lea.vmem (%p78_p3), %s904_s1, %s685_s24  ;;  %s175_s29 = scalar_lea.vmem (%p78_p3), [#allocation2], %s662_s25 }
  0x13   : > { %v194_v0 = vld [vmem:[%s181_s28] sm:$0xff] (%p78_p3)  ;;  %v196_v1 = vld [vmem:[%s181_s28 + $0x8] sm:$0xff] (%p78_p3) }
  0x14   : > { %v198_v2 = vld [vmem:[%s181_s28 + $0x40] sm:$0xff] (%p78_p3)  ;;  %195 = vst [vmem:[%s175_s29] sm:$0xff] (%p78_p3), %v194_v0  ;;  %197 = vst [vmem:[%s175_s29 + $0x8] sm:$0xff] (%p78_p3), %v196_v1  ;;  %v200_v3 = vld [vmem:[%s181_s28 + $0x48] sm:$0xff] (%p78_p3) }
  0x15   : > { %199 = vst [vmem:[%s175_s29 + $0x10] sm:$0xff] %v198_v2  ;;  %v202_v4 = vld [vmem:[%s181_s28 + $0x80] sm:$0xff]  ;;  %v204_v5 = vld [vmem:[%s181_s28 + $0x88] sm:$0xff]  ;;  %201 = vst [vmem:[%s175_s29 + $0x18] sm:$0xff] %v200_v3 }
  0x16   : > { %203 = vst [vmem:[%s175_s29 + $0x20] sm:$0xff] %v202_v4  ;;  %205 = vst [vmem:[%s175_s29 + $0x28] sm:$0xff] %v204_v5  ;;  %v206_v6 = vld [vmem:[%s181_s28 + $0xc0] sm:$0xff]  ;;  %v208_v7 = vld [vmem:[%s181_s28 + $0xc8] sm:$0xff] }
  0x17   : > { %207 = vst [vmem:[%s175_s29 + $0x30] sm:$0xff] %v206_v6  ;;  %209 = vst [vmem:[%s175_s29 + $0x38] sm:$0xff] %v208_v7 }
  0x18 PF: > { %p665_p8 = scmp.ge.s32.totalorder %s779_s16, 1  ;;  %p222_p9 = scmp.lt.s32.totalorder %s779_s16, 5 }
  0x1a   : > { %p223_p10 = pnand %p665_p8, %p222_p9 }
  0x1b   : > { %s229_s30 = sand.u32 (!%p223_p10), 1, %s763_s12   ;;  %s668_s8 = sshll.u32 (!%p223_p10), %s771_s14, 2 }
  0x1c   : > { %226 = sbr.rel (%p223_p10) target bundleno = 255 (0xff), region = 51  ;;  %s853_s4 = sshll.u32 (!%p223_p10), %s229_s30, 6 }
  0x1d   : > { %s231_s5 = scalar_lea.vmem (!%p223_p10), [#allocation2], %s853_s4  ;;  %p275_p11 = scmp.lt.s32.totalorder (!%p223_p10), %s668_s8, 15 }
  0x1e   : > { %s864_s12 = scalar_lea.vmem (!%p223_p10), [#allocation3], %s853_s4 }
  0x21   : > { %v781_v8 = vmov 0   ;;  %v728_v9 = vld [vmem:[%s231_s5 + $0x24] ss:$16 sps:$4 sm:$0xff]   ;;  %v730_v10 = vld [vmem:[%s231_s5 + $0x2c] ss:$16 sps:$4 sm:$0xff]   ;;  %vm379_vm0 = vcmask 261120   ;;  %v288_v18 = vlaneseq }
  0x22   : > { %415 = vmatprep.mubr.bf16.mxu0 %v781_v8  ;;  %458 = vmatprep.mubr.bf16.mxu1 %v781_v8  ;;  %v732_v11 = vld [vmem:[%s231_s5 + $0x20] ss:$16 sps:$4 sm:$0xff]   ;;  %v733_v12 = vld [vmem:[%s231_s5 + $0x28] ss:$16 sps:$4 sm:$0xff]   ;;  %v734_v13 = vld [vmem:[%s231_s5 + $0x4] ss:$16 sps:$4 sm:$0xff]  }
  0x23   : > { %395 = vmatprep.subr.bf16.mxu0 %v728_v9  ;;  %438 = vmatprep.subr.bf16.mxu1 %v730_v10  ;;  %v736_v14 = vld [vmem:[%s231_s5 + $0xc] ss:$16 sps:$4 sm:$0xff]   ;;  %v738_v15 = vld [vmem:[%s231_s5] ss:$16 sps:$4 sm:$0xff]   ;;  %v739_v16 = vld [vmem:[%s231_s5 + $0x8] ss:$16 sps:$4 sm:$0xff]  }
  0x24   : > { %396 = vmatpush1.bf16.msra.mxu0 %v732_v11  ;;  %439 = vmatpush1.bf16.msra.mxu1 %v733_v12  ;;  %v740_v17 = vld [vmem:[%s903_s0] sm:$0xff]   ;;  %s915_s8 = smov (!%p275_p11, %s668_s8), 15  ;;  %v289_v19 = vshrl.u32 %v288_v18, 7  ;;  %s686_s18 = sshll.u32 (%p837_p6), %s771_s14, 5 }
  0x25   : > { %397 = vmatprep.subr.bf16.mxu0 %v734_v13  ;;  %440 = vmatprep.subr.bf16.mxu1 %v736_v14  ;;  %s277_s11 = scalar_lea.vmem %s905_s2, %s915_s8  ;;  %s524_s23 = scalar_lea.vmem (%p837_p6), %s906_s3, %s686_s18 }
  0x26   : > { %v290_v20 = vsub.s32 0, %v289_v19  ;;  %v298_v21 = vsub.s32 2, %v289_v19  ;;  %v286_v22 = vld [vmem:[%s277_s11] sm:$0xf]  ;;  %v294_v23 = vsub.s32 1, %v289_v19  ;;  %v302_v24 = vsub.s32 3, %v289_v19 }
  0x28   : > { %398 = vmatpush1.bf16.msra.mxu0 %v738_v15  ;;  %441 = vmatpush1.bf16.msra.mxu1 %v739_v16  ;;  %v291_v25 = vrot.slane %v286_v22, %v290_v20  ;;  %v299_v26 = vrot.slane %v286_v22, %v298_v21  ;;  %v295_v27 = vrot.slane %v286_v22, %v294_v23 }
  0x29   : > { %v303_v28 = vrot.slane %v286_v22, %v302_v24 }
  0x2b   : > { %678 = vmatmul.mubr.msk.bf16.vlgmr.msra.gmra.mxu0 %vm379_vm0, %v740_v17  ;;  %679 = vmatmul.mubr.msk.bf16.vlgmr.msra.gmra.mxu1 %vm379_vm0, %v740_v17 }
  0xeb   : > { %v417_v29 = vpop.f32.mrf.mxu0  ;;  %v460_v30 = vpop.f32.mrf.mxu1 }
  0xec   : > { %v469_v31 = vadd.f32 %v417_v29, %v291_v25  ;;  %v471_v32 = vadd.f32 %v460_v30, %v299_v26 }
  0xed   : > { %v419_v33 = vpop.f32.mrf.mxu0  ;;  %v462_v34 = vpop.f32.mrf.mxu1 }
  0xee   : > { %v496_v35 = vmax.f32 %v469_v31, 0.0  ;;  %v498_v36 = vmax.f32 %v471_v32, 0.0  ;;  %v470_v37 = vadd.f32 %v419_v33, %v295_v27  ;;  %v472_v38 = vadd.f32 %v462_v34, %v303_v28 }
  0xef   : > { %v421_v39 = vpop.f32.mrf.mxu0  ;;  %v464_v40 = vpop.f32.mrf.mxu1 }
  0xf0   : > { %504 = vst [vmem:[%s864_s12] sm:$0xff] %v496_v35  ;;  %506 = vst [vmem:[%s864_s12 + $0x10] sm:$0xff] %v498_v36  ;;  %v497_v41 = vmax.f32 %v470_v37, 0.0  ;;  %v499_v42 = vmax.f32 %v472_v38, 0.0  ;;  %v473_v43 = vadd.f32 %v421_v39, %v291_v25  ;;  %v475_v44 = vadd.f32 %v464_v40, %v299_v26 }
  0xf1   : > { %v423_v45 = vpop.f32.mrf.mxu0  ;;  %v466_v46 = vpop.f32.mrf.mxu1 }
  0xf2   : > { %505 = vst [vmem:[%s864_s12 + $0x8] sm:$0xff] %v497_v41  ;;  %507 = vst [vmem:[%s864_s12 + $0x18] sm:$0xff] %v499_v42  ;;  %v500_v47 = vmax.f32 %v473_v43, 0.0  ;;  %v502_v48 = vmax.f32 %v475_v44, 0.0  ;;  %v474_v49 = vadd.f32 %v423_v45, %v295_v27  ;;  %v476_v50 = vadd.f32 %v466_v46, %v303_v28  ;;  %518 = sbr.rel (!%p837_p6) target bundleno = 255 (0xff), region = 67 }
  0xf4   : > { %508 = vst [vmem:[%s864_s12 + $0x20] sm:$0xff] %v500_v47  ;;  %510 = vst [vmem:[%s864_s12 + $0x30] sm:$0xff] %v502_v48  ;;  %v501_v51 = vmax.f32 %v474_v49, 0.0  ;;  %v503_v52 = vmax.f32 %v476_v50, 0.0 }
  0xf6   : > { %509 = vst [vmem:[%s864_s12 + $0x28] sm:$0xff] %v501_v51  ;;  %511 = vst [vmem:[%s864_s12 + $0x38] sm:$0xff] %v503_v52 }
  0xf7   : > { %v537_v53 = vld [vmem:[%s864_s12] sm:$0xff]  ;;  %v541_v55 = vld [vmem:[%s864_s12 + $0x10] sm:$0xff] }
  0xf8   : > { %538 = vst [vmem:[%s524_s23] sm:$0xff] %v537_v53  ;;  %542 = vst [vmem:[%s524_s23 + $0x10] sm:$0xff] %v541_v55 }
  0xf9   : > { %v539_v54 = vld [vmem:[%s864_s12 + $0x8] sm:$0xff]  ;;  %v543_v56 = vld [vmem:[%s864_s12 + $0x18] sm:$0xff] }
  0xfa   : > { %540 = vst [vmem:[%s524_s23 + $0x8] sm:$0xff] %v539_v54  ;;  %544 = vst [vmem:[%s524_s23 + $0x18] sm:$0xff] %v543_v56 }
  0xfb   : > { %v545_v57 = vld [vmem:[%s864_s12 + $0x20] sm:$0xff]  ;;  %v549_v59 = vld [vmem:[%s864_s12 + $0x30] sm:$0xff] }
  0xfc   : > { %546 = vst [vmem:[%s524_s23 + $0x80] sm:$0xff] %v545_v57  ;;  %550 = vst [vmem:[%s524_s23 + $0x90] sm:$0xff] %v549_v59 }
  0xfd   : > { %v547_v58 = vld [vmem:[%s864_s12 + $0x28] sm:$0xff]  ;;  %v551_v60 = vld [vmem:[%s864_s12 + $0x38] sm:$0xff] }
  0xfe   : > { %548 = vst [vmem:[%s524_s23 + $0x88] sm:$0xff] %v547_v58  ;;  %552 = vst [vmem:[%s524_s23 + $0x98] sm:$0xff] %v551_v60 }
  0xff PF: > { %s13_s16 = sadd.s32 1, %s779_s16   ;;  %s908_s12 = smov %s767_s13 }
 0x100   : > { %p10_p12 = scmp.ge.s32.totalorder %s13_s16, 6   ;;  %s909_s13 = smov %s842_s22 }
 0x101   : > { %s910_s14 = smov %s775_s15  ;;  %s911_s15 = smov %s913_s17 }
 0x102   :  { %12 = sbr.rel (!%p10_p12) target bundleno = 3 (0x3), region = 127 }

// kernel: transformer_decoder_forward.24
= control target key start
LH: loop header
LB: loop body
LE: loop exit
PB: predicated region body
PF: predicated region fallthrough
CT: control target
= control target key end

     0   :  { %s847_s9 = smov 0   ;;  %s940_s0 = inlined_call_operand.vmem [shape: f32[2,8,32], index: 0, kind: input, shape index: {}]   ;;  %s941_s1 = inlined_call_operand.vmem [shape: f32[2,10,64], index: 1, kind: input, shape index: {}]   ;;  %s942_s2 = inlined_call_operand.vmem [shape: f32[2,8,32], index: 2, kind: output, shape index: {}]  }
   0x1 LB: > { %s692_s10 = sadd.s32 4294967295, %s818_s9   ;;  %p696_p0 = scmp.ge.s32.totalorder %s818_s9, 1  ;;  %s818_s9 = sphi %s847_s9, %s12_s9  }
   0x2   : > { %p121_p1 = scmp.lt.s32.totalorder %s818_s9, 3 }
   0x4   : > { %p122_p2 = pnand %p696_p0, %p121_p1 }
   0x5   : > { %p146_p3 = scmp.lt.s32.totalorder (!%p122_p2), %s692_s10, 1  ;;  %s822_s19 = smov (!%p122_p2), 96  }
   0x6   : > { %125 = sbr.rel (%p122_p2) target bundleno = 1372 (0x55c), region = 28  ;;  %s823_s20 = smov (!%p122_p2), 120  }
   0x7   : > { %s824_s21 = smov (!%p122_p2), 112   ;;  %s825_s22 = smov (!%p122_p2), 104  }
   0x8   : > { %s826_s26 = smov (!%p122_p2), 88   ;;  %s827_s27 = smov (!%p122_p2), 72  }
   0x9   : > { %s828_s28 = smov (!%p122_p2), 80   ;;  %s829_s29 = smov (!%p122_p2), 8  }
   0xa   : > { %s830_s30 = smov (!%p122_p2), 16   ;;  %s831_s3 = smov (!%p122_p2), 24  }
   0xb   : > { %v820_v0 = vmov 0.0   ;;  %vm821_vm0 = vmmov 0   ;;  %s944_s10 = smov (!%p146_p3, %s692_s10), 1  ;;  %vm167_vm1 = vcmask 64512   ;;  %vm214_vm2 = vcmask 80896  }
   0xc   : > { %728 = vmatprep.subr.bf16.mxu0 %v820_v0  ;;  %730 = vmatprep.mubr.msk.bf16.mxu0 %vm821_vm0, %v820_v0  ;;  %s711_s11 = sshll.u32 %s944_s10, 4  ;;  %s697_s12 = sshll.u32 %s944_s10, 3  ;;  %vm233_vm3 = vcmask 1044480   ;;  %vm393_vm4 = vcmask 130112   ;;  %vm509_vm5 = vcmask 195712   ;;  %vm625_vm6 = vcmask 261312  }
   0xd   : > { %734 = vmatprep.subr.bf16.mxu1 %v820_v0  ;;  %736 = vmatprep.mubr.msk.bf16.mxu1 %vm821_vm0, %v820_v0  ;;  %s154_s15 = scalar_lea.vmem %s941_s1, %s711_s11  ;;  %s149_s18 = scalar_lea.vmem %s940_s0, %s697_s12 }
   0xe   : > { %v164_v1 = vld [vmem:[%s154_s15] sm:$0xff]  ;;  %v165_v2 = vld [vmem:[%s154_s15 + $0x8] sm:$0x3]  ;;  %s909_s25 = scalar_lea.vmem %s942_s2, %s697_s12 }
   0xf   : > { %v161_v3 = vld [vmem:[%s149_s18] sm:$0xff]  ;;  %v873_v4 = vpack.c.bf16 %v165_v2, %v164_v1 }
  0x10   : > { %v162_v6 = vpack.c.bf16 %v161_v3, %v161_v3 }
  0x11   : > { %v172_v5 = vsel %vm167_vm1, %v873_v4, 0  ;;  %228 = vrot.lane.b32.xlu1 %v873_v4, %s822_s19 }
  0x12   : > { %729 = vmatpush3.bf16.xpose.msra.mxu0 %v172_v5  ;;  %v163_v7 = vmul.bf16 1052065461, %v162_v6 }
  0x13   : > { %746 = vmatprep.subr.bf16.mxu0 %v820_v0 }
  0x15   : > { %281 = vrot.lane.b32.xlu1 %v873_v4, %s823_s20 }
  0x19   : > { %731 = vmatmul.mubr.msk.bf16.vlgmr.msra.gmra.mxu0 %vm167_vm1, %v163_v7  ;;  %397 = vrot.lane.b32.xlu1 %v873_v4, %s824_s21 }
  0x1a   : > { %748 = vmatprep.mubr.msk.bf16.mxu0 %vm821_vm0, %v820_v0 }
  0x1d   : > { %395 = vrot.lane.b32.xlu1 %v163_v7, %s824_s21 }
  0x21   : > { %513 = vrot.lane.b32.xlu1 %v873_v4, %s825_s22 }
  0x25   : > { %511 = vrot.lane.b32.xlu1 %v163_v7, %s825_s22 }
  0x83   : > { %v229_v18 = vpop.permute.xlu1 %228 }
  0x84   : > { %v235_v19 = vsel %vm233_vm3, %v229_v18, 0 }
  0x85   : > { %735 = vmatpush3.bf16.msra.mxu1 %v235_v19 }
  0x86   : > { %740 = vmatprep.subr.bf16.mxu1 %v820_v0 }
  0x87   : > { %v282_v22 = vpop.permute.xlu1 %281 }
  0x88   : > { %v287_v24 = vsel %vm167_vm1, %v282_v22, 0 }
  0x8b   : > { %v398_v26 = vpop.permute.xlu1 %397 }
  0x8c   : > { %v403_v29 = vsel %vm167_vm1, %v398_v26, 0 }
  0x8f   : > { %v396_v28 = vpop.permute.xlu1 %395 }
  0x93   : > { %v514_v30 = vpop.permute.xlu1 %513 }
  0x94   : > { %v519_v31 = vsel %vm167_vm1, %v514_v30, 0 }
  0x97   : > { %v512_v32 = vpop.permute.xlu1 %511 }
  0xd9   : > { %v208_v8 = vpop.f32.mrf.mxu0 }
  0xda   : > { %v215_v9 = vsel %vm214_vm2, %v208_v8, -inf }
  0xdb   : > { %216 = vmax.xlane.f32.xlu0 %v215_v9  ;;  %v732_v10 = vpop.f32.mrf.mxu0 }
  0xdd   : > { %v211_v11 = vpop.f32.mrf.mxu0 }
  0xdf   : > { %v733_v12 = vpop.f32.mrf.mxu0 }
 0x164   : > { %v217_v13 = vpop.xlane.xlu0 %216 }
 0x165   : > { %v218_v14 = vsub.f32 %v208_v8, %v217_v13 }
 0x167   : > { %v219_v15 = vmul.f32 1.442695, %v218_v14 }
 0x169   : > { %796 = vpow2.f32 %v219_v15 }
 0x176   : > { %v797_v16 = vpop.eup %796 }
 0x177   : > { %v221_v17 = vsel %vm214_vm2, %v797_v16, 0.0 }
 0x178   : > { %222 = vadd.xlane.f32.xlu0 %v221_v17 }
 0x18e   : > { %279 = vrot.lane.b32.xlu0 %v163_v7, %s823_s20 }
 0x201   : > { %v223_v20 = vpop.xlane.xlu0 %222 }
 0x202   : > { %798 = vrcp.f32 %v223_v20 }
 0x205   : > { %v280_v27 = vpop.permute.xlu0 %279 }
 0x20f   : > { %v799_v21 = vpop.eup %798 }
 0x210   : > { %v225_v23 = vmul.f32 %v799_v21, %v797_v16 }
 0x212   : > { %v226_v25 = vpack.c.bf16 %v225_v23, %v225_v23 }
 0x214   : > { %737 = vmatmul.mubr.msk.bf16.vlgmr.msra.gmra.mxu1 %vm214_vm2, %v226_v25 }
 0x215   : > { %741 = vmatpush3.bf16.xpose.msra.mxu1 %v287_v24  ;;  %742 = vmatprep.mubr.msk.bf16.mxu1 %vm821_vm0, %v820_v0 }
 0x216   : > { %752 = vmatprep.subr.bf16.mxu1 %v820_v0 }
 0x21c   : > { %743 = vmatmul.mubr.msk.bf16.vlgmr.msra.gmra.mxu1 %vm167_vm1, %v280_v27 }
 0x21d   : > { %753 = vmatpush3.bf16.xpose.msra.mxu1 %v403_v29  ;;  %754 = vmatprep.mubr.msk.bf16.mxu1 %vm821_vm0, %v820_v0 }
 0x21e   : > { %764 = vmatprep.subr.bf16.mxu1 %v820_v0 }
 0x224   : > { %755 = vmatmul.mubr.msk.bf16.vlgmr.msra.gmra.mxu1 %vm167_vm1, %v396_v28 }
 0x225   : > { %765 = vmatpush3.bf16.xpose.msra.mxu1 %v519_v31  ;;  %766 = vmatprep.mubr.msk.bf16.mxu1 %vm821_vm0, %v820_v0 }
 0x22c   : > { %767 = vmatmul.mubr.msk.bf16.vlgmr.msra.gmra.mxu1 %vm167_vm1, %v512_v32 }
 0x2d4   : > { %v271_v33 = vpop.f32.mrf.mxu1 }
 0x2d5   : > { %277 = vst.msk [vmem:[%s909_s25] sm:$0xff] %vm167_vm1, %v271_v33 }
 0x2d6   : > { %v738_v34 = vpop.f32.mrf.mxu1 }
 0x2d8   : > { %v274_v35 = vpop.f32.mrf.mxu1 }
 0x2da   : > { %v739_v36 = vpop.f32.mrf.mxu1 }
 0x2dc   : > { %v323_v37 = vpop.f32.mrf.mxu1 }
 0x2dd   : > { %v329_v38 = vsel %vm214_vm2, %v323_v37, -inf }
 0x2de   : > { %330 = vmax.xlane.f32.xlu1 %v329_v38  ;;  %v744_v39 = vpop.f32.mrf.mxu1 }
 0x2e0   : > { %v326_v40 = vpop.f32.mrf.mxu1 }
 0x2e2   : > { %v745_v41 = vpop.f32.mrf.mxu1 }
 0x2e4   : > { %v439_v42 = vpop.f32.mrf.mxu1 }
 0x2e5   : > { %v445_v43 = vsel %vm214_vm2, %v439_v42, -inf }
 0x2e6   : > { %446 = vmax.xlane.f32.xlu0 %v445_v43  ;;  %v756_v44 = vpop.f32.mrf.mxu1 }
 0x2e8   : > { %v442_v45 = vpop.f32.mrf.mxu1 }
 0x2ea   : > { %v757_v46 = vpop.f32.mrf.mxu1 }
 0x2ec   : > { %v555_v47 = vpop.f32.mrf.mxu1 }
 0x2ed   : > { %v561_v48 = vsel %vm214_vm2, %v555_v47, -inf }
 0x2ee   : > { %562 = vmax.xlane.f32.xlu1 %v561_v48  ;;  %v768_v49 = vpop.f32.mrf.mxu1 }
 0x2f0   : > { %v558_v50 = vpop.f32.mrf.mxu1 }
 0x2f2   : > { %v769_v51 = vpop.f32.mrf.mxu1 }
 0x2ff   : > { %341 = vrot.lane.b32.xlu1 %v873_v4, %s826_s26 }
 0x367   : > { %v331_v52 = vpop.xlane.xlu1 %330 }
 0x368   : > { %v332_v53 = vsub.f32 %v323_v37, %v331_v52 }
 0x36a   : > { %v333_v54 = vmul.f32 1.442695, %v332_v53 }
 0x36c   : > { %800 = vpow2.f32 %v333_v54 }
 0x36f   : > { %v447_v55 = vpop.xlane.xlu0 %446 }
 0x370   : > { %v448_v56 = vsub.f32 %v439_v42, %v447_v55 }
 0x372   : > { %v449_v57 = vmul.f32 1.442695, %v448_v56 }
 0x374   : > { %802 = vpow2.f32 %v449_v57 }
 0x377   : > { %v563_v58 = vpop.xlane.xlu1 %562 }
 0x378   : > { %v564_v59 = vsub.f32 %v555_v47, %v563_v58 }
 0x379   : > { %v801_v60 = vpop.eup %800 }
 0x37a   : > { %v565_v61 = vmul.f32 1.442695, %v564_v59  ;;  %v335_v62 = vsel %vm214_vm2, %v801_v60, 0.0 }
 0x37b   : > { %336 = vadd.xlane.f32.xlu0 %v335_v62  ;;  %v342_v63 = vpop.permute.xlu1 %341 }
 0x37c   : > { %804 = vpow2.f32 %v565_v61  ;;  %v347_v1 = vsel %vm233_vm3, %v342_v63, 0 }
 0x37d   : > { %747 = vmatpush3.bf16.msra.mxu0 %v347_v1 }
 0x37e   : > { %758 = vmatprep.subr.bf16.mxu0 %v820_v0 }
 0x381   : > { %v803_v2 = vpop.eup %802 }
 0x382   : > { %v451_v3 = vsel %vm214_vm2, %v803_v2, 0.0 }
 0x383   : > { %452 = vadd.xlane.f32.xlu1 %v451_v3 }
 0x389   : > { %v805_v5 = vpop.eup %804 }
 0x38a   : > { %v567_v6 = vsel %vm214_vm2, %v805_v5, 0.0 }
 0x38b   : > { %568 = vadd.xlane.f32.xlu0 %v567_v6 }
 0x394   : > { %573 = vrot.lane.b32.xlu1 %v873_v4, %s827_s27 }
 0x3a1   : > { %457 = vrot.lane.b32.xlu0 %v873_v4, %s828_s28 }
 0x404   : > { %v337_v7 = vpop.xlane.xlu0 %336 }
 0x405   : > { %806 = vrcp.f32 %v337_v7 }
 0x40c   : > { %v453_v8 = vpop.xlane.xlu1 %452 }
 0x40d   : > { %808 = vrcp.f32 %v453_v8 }
 0x410   : > { %v574_v4 = vpop.permute.xlu1 %573 }
 0x411   : > { %v579_v18 = vsel %vm233_vm3, %v574_v4, 0 }
 0x412   : > { %v807_v9 = vpop.eup %806 }
 0x413   : > { %v339_v10 = vmul.f32 %v807_v9, %v801_v60 }
 0x414   : > { %v569_v11 = vpop.xlane.xlu0 %568 }
 0x415   : > { %810 = vrcp.f32 %v569_v11  ;;  %v340_v12 = vpack.c.bf16 %v339_v10, %v339_v10 }
 0x417   : > { %749 = vmatmul.mubr.msk.bf16.vlgmr.msra.gmra.mxu0 %vm214_vm2, %v340_v12 }
 0x418   : > { %v458_v13 = vpop.permute.xlu0 %457  ;;  %760 = vmatprep.mubr.msk.bf16.mxu0 %vm821_vm0, %v820_v0 }
 0x419   : > { %v463_v14 = vsel %vm233_vm3, %v458_v13, 0 }
 0x41a   : > { %v809_v15 = vpop.eup %808  ;;  %759 = vmatpush3.bf16.msra.mxu0 %v463_v14 }
 0x41b   : > { %v455_v16 = vmul.f32 %v809_v15, %v803_v2  ;;  %770 = vmatprep.subr.bf16.mxu0 %v820_v0 }
 0x41d   : > { %v456_v17 = vpack.c.bf16 %v455_v16, %v455_v16 }
 0x41f   : > { %761 = vmatmul.mubr.msk.bf16.vlgmr.msra.gmra.mxu0 %vm214_vm2, %v456_v17 }
 0x420   : > { %771 = vmatpush3.bf16.msra.mxu0 %v579_v18  ;;  %772 = vmatprep.mubr.msk.bf16.mxu0 %vm821_vm0, %v820_v0 }
 0x422   : > { %v811_v19 = vpop.eup %810 }
 0x423   : > { %v571_v20 = vmul.f32 %v811_v19, %v805_v5 }
 0x425   : > { %v572_v21 = vpack.c.bf16 %v571_v20, %v571_v20 }
 0x427   : > { %773 = vmatmul.mubr.msk.bf16.vlgmr.msra.gmra.mxu0 %vm214_vm2, %v572_v21 }
 0x4d7   : > { %v383_v22 = vpop.f32.mrf.mxu0 }
 0x4d8   : > { %390 = vrot.lane.b32.xlu1 %v383_v22, %s829_s29 }
 0x4d9   : > { %v750_v23 = vpop.f32.mrf.mxu0 }
 0x4db   : > { %v386_v24 = vpop.f32.mrf.mxu0 }
 0x4dd   : > { %v751_v25 = vpop.f32.mrf.mxu0 }
 0x4df   : > { %v499_v26 = vpop.f32.mrf.mxu0 }
 0x4e0   : > { %506 = vrot.lane.b32.xlu0 %v499_v26, %s830_s30 }
 0x4e1   : > { %v762_v27 = vpop.f32.mrf.mxu0 }
 0x4e3   : > { %v502_v28 = vpop.f32.mrf.mxu0 }
 0x4e5   : > { %v763_v0 = vpop.f32.mrf.mxu0 }
 0x4e7   : > { %v615_v29 = vpop.f32.mrf.mxu0 }
 0x4e8   : > { %622 = vrot.lane.b32.xlu1 %v615_v29, %s831_s3 }
 0x4e9   : > { %v774_v30 = vpop.f32.mrf.mxu0 }
 0x4eb   : > { %v618_v31 = vpop.f32.mrf.mxu0 }
 0x4ed   : > { %v775_v32 = vpop.f32.mrf.mxu0 }
 0x54a   : > { %v391_v33 = vpop.permute.xlu1 %390 }
 0x54b   : > { %394 = vst.msk [vmem:[%s909_s25] sm:$0xff] %vm393_vm4, %v391_v33 }
 0x552   : > { %v507_v34 = vpop.permute.xlu0 %506 }
 0x553   : > { %510 = vst.msk [vmem:[%s909_s25] sm:$0xff] %vm509_vm5, %v507_v34 }
 0x55a   : > { %v623_v35 = vpop.permute.xlu1 %622 }
 0x55b   : > { %626 = vst.msk [vmem:[%s909_s25] sm:$0xff] %vm625_vm6, %v623_v35 }
 0x55c PF: > { %s12_s9 = sadd.s32 1, %s818_s9  }
 0x55d   : > { %p9_p4 = scmp.ge.s32.totalorder %s12_s9, 4  }
 0x55f   :  { %11 = sbr.rel (!%p9_p4) target bundleno = 1 (0x1), region = 61 }

// kernel: transformer_decoder_forward.37
= control target key start
LH: loop header
LB: loop body
LE: loop exit
PB: predicated region body
PF: predicated region fallthrough
CT: control target
= control target key end

     0   :  { %v167_v1 = vmov 0.0   ;;  %vm168_vm0 = vmmov 0   ;;  %vm27_vm1 = vcmask 408576   ;;  %s211_s0 = inlined_call_operand.vmem [shape: bf16[16,32], index: 0, kind: input, shape index: {}]   ;;  %s212_s1 = inlined_call_operand.vmem [shape: bf16[32,50], index: 1, kind: input, shape index: {}]   ;;  %s213_s2 = inlined_call_operand.vmem [shape: f32[1,50], index: 2, kind: input, shape index: {}]   ;;  %s214_s3 = inlined_call_operand.hbm [shape: f32[16,50], index: 3, kind: output, shape index: {}]  }
   0x1   :  { %v142_v0 = vld [vmem:[%s212_s1 + $0x8] sm:$0xff]   ;;  %129 = vmatprep.subr.bf16.mxu0 %v167_v1  ;;  %v143_v2 = vld [vmem:[%s212_s1] sm:$0xff]   ;;  %133 = vmatprep.mubr.msk.bf16.mxu0 %vm168_vm0, %v167_v1 }
   0x2   :  { %130 = vmatpush3.bf16.msra.mxu0 %v142_v0  ;;  %v121_v3 = vld [vmem:[%s213_s2] ss:$0 sm:$0xff] }
   0x3   :  { %131 = vmatprep.subr.bf16.mxu0 %v167_v1 }
   0x4   :  { %8 = vsyncpa [#allocation3], 0  ;;  %28 = vst.msk [vmem:[#allocation2] sm:$0xff] %vm27_vm1, %v121_v3  ;;  %v144_v4 = vld [vmem:[%s211_s0] sm:$0xff]   ;;  %vm55_vm2 = vcmask 261120   ;;  %s169_s1 = smov [#allocation2]  }
   0x5   :  { %29 = vst.msk [vmem:[#allocation2 + $0x8] sm:$0xff] %vm27_vm1, %v121_v3  ;;  %s110_s20 = sshll.u32 %s169_s1, 4  ;;  %s111_s20 = int_to_ptr.vmem [resolvable:$true] %s110_s20 }
   0x6   :  { %132 = vmatpush3.bf16.msra.mxu0 %v143_v2  ;;  %s145_s2 = scalar_lea.vmem %s111_s20, 256  ;;  %p150_p1 = scmp.lt.s32.totalorder %s111_s20, %s111_s20 }
   0x7   :  { %p146_p0 = scmp.ne.s32.totalorder %s111_s20, %s145_s2  ;;  %p151_p2 = scmp.lt.s32.totalorder %s145_s2, %s145_s2 }
   0x9   :  { %134 = vmatmul.mubr.msk.bf16.vlgmr.msra.gmra.mxu0 %vm55_vm2, %v144_v4  ;;  %p152_p3 = por %p151_p2, %p150_p1 }
   0xb   :  { %v30_v5 = vld [vmem:[#allocation2] sm:$0xff]  ;;  %p153_p4 = pnand %p152_p3, %p146_p0 }
   0xc   :  { %v31_v9 = vld [vmem:[#allocation2 + $0x8] sm:$0xff] }
  0xc9   :  { %v93_v6 = vpop.f32.mrf.mxu0 }
  0xca   :  { %v100_v7 = vadd.f32 %v93_v6, %v30_v5 }
  0xcb   :  { %v135_v8 = vpop.f32.mrf.mxu0 }
  0xcc   :  { %103 = vst.msk [vmem:[#allocation2] sm:$0xff] %vm27_vm1, %v100_v7 }
  0xcd   :  { %v96_v10 = vpop.f32.mrf.mxu0 }
  0xce   :  { %v101_v11 = vadd.f32 %v96_v10, %v31_v9 }
  0xcf   :  { %v136_v12 = vpop.f32.mrf.mxu0 }
  0xd0   :  { %104 = vst.msk [vmem:[#allocation2 + $0x8] sm:$0xff] %vm27_vm1, %v101_v11 }
  0xd1   :  { %156 = shalt.err (!%p153_p4)
}
  0xd2   :  { %s170_s0 = smov 128   ;;  %s171_s21 = smov 8  }
  0xd3   :  { %116 = dma.vmem_to_hbm [thread:$0]  %s111_s20, 256, %s214_s3, [#allocation3], %s170_s0, %s170_s0, %s171_s21  }
  0xd4   :  { %165 = dma.done.wait [#allocation3], 256  }
  0xd5   :  { %166 = vsyncadd [#allocation3], 4294967040 }
  0xd6   :  { %120 = vsyncpa [#allocation3], 1 }

// kernel: transformer_decoder_forward.27
= control target key start
LH: loop header
LB: loop body
LE: loop exit
PB: predicated region body
PF: predicated region fallthrough
CT: control target
= control target key end

     0   :  { %s1139_s21 = smov 0   ;;  %s1141_s22 = smov 0   ;;  %s1299_s0 = inlined_call_operand.vmem [shape: bf16[16,2048], index: 0, kind: input, shape index: {}]   ;;  %s1300_s1 = inlined_call_operand.vmem [shape: bf16[2048,32], index: 1, kind: input, shape index: {}]   ;;  %s1301_s2 = inlined_call_operand.vmem [shape: f32[1,32], index: 2, kind: input, shape index: {}]   ;;  %s1302_s3 = inlined_call_operand.vmem [shape: f32[16,32], index: 3, kind: input, shape index: {}]   ;;  %s1303_s4 = inlined_call_operand.vmem [shape: f32[1,32], index: 4, kind: input, shape index: {}]   ;;  %s1304_s5 = inlined_call_operand.vmem [shape: f32[1,32], index: 5, kind: input, shape index: {}]   ;;  %s1305_s6 = inlined_call_operand.vmem [shape: f32[16,32], index: 6, kind: output, shape index: {}]  }
   0x1   :  { %s1143_s23 = smov 0   ;;  %s1145_s24 = smov 0  }
   0x2   :  { %s1147_s25 = smov 0  }
   0x3 LB: > { %s25_s26 = sadd.s32 1, %s1098_s24  ;;  %p44_p1 = scmp.ne.s32.totalorder %s1090_s22, %s1086_s21  ;;  %s1102_s25 = sphi %s1147_s25, %s16_s25   ;;  %s1098_s24 = sphi %s1145_s24, %s1309_s24   ;;  %s1094_s23 = sphi %s1143_s23, %s1308_s23   ;;  %s1090_s22 = sphi %s1141_s22, %s1307_s22   ;;  %s1086_s21 = sphi %s1139_s21, %s1306_s21  }
   0x4   : > { %p26_p0 = scmp.ge.s32.totalorder %s25_s26, 4  ;;  %p45_p2 = scmp.eq.s32.totalorder %s1102_s25, 0 }
   0x5   : > { %s37_s28 = sadd.s32 1, %s1090_s22  ;;  %p884_p5 = scmp.ge.s32.totalorder %s1102_s25, 4 }
   0x6   : > { %s1311_s26 = smov (%p26_p0, %s25_s26), 0  ;;  %p46_p3 = por %p45_p2, %p44_p1 }
   0x7   : > { %s33_s27 = ssub.s32 %s1098_s24, %s1311_s26  ;;  %229 = sbr.rel (%p884_p5) target bundleno = 18 (0x12), region = 32 }
   0x8   : > { %p35_p4 = scmp.eq.s32.totalorder %s33_s27, 0 }
   0xa   : > { %s1174_s29 = scalar_select %p35_p4, %s1090_s22, %s37_s28  }
   0xc   : > { %232 = sbr.rel (!%p46_p3) target bundleno = 18 (0x12), region = 36  ;;  %s234_s30 = sand.u32 (%p46_p3), 1, %s1090_s22  }
   0xd   : > { %s937_s7 = sshll.u32 (%p46_p3), %s1098_s24, 4  ;;  %s885_s8 = sshll.u32 (%p46_p3), %s234_s30, 5 }
   0xe   : > { %s242_s11 = scalar_lea.vmem (%p46_p3), %s1299_s0, %s937_s7  ;;  %s236_s12 = scalar_lea.vmem (%p46_p3), [#allocation2], %s885_s8 }
   0xf   : > { %v255_v0 = vld [vmem:[%s242_s11] sm:$0xff] (%p46_p3)  ;;  %v257_v1 = vld [vmem:[%s242_s11 + $0x8] sm:$0xff] (%p46_p3) }
  0x10   : > { %v259_v2 = vld [vmem:[%s242_s11 + $0x40] sm:$0xff] (%p46_p3)  ;;  %256 = vst [vmem:[%s236_s12] sm:$0xff] (%p46_p3), %v255_v0  ;;  %258 = vst [vmem:[%s236_s12 + $0x8] sm:$0xff] (%p46_p3), %v257_v1  ;;  %v261_v3 = vld [vmem:[%s242_s11 + $0x48] sm:$0xff] (%p46_p3) }
  0x11   : > { %260 = vst [vmem:[%s236_s12 + $0x10] sm:$0xff] %v259_v2  ;;  %262 = vst [vmem:[%s236_s12 + $0x18] sm:$0xff] %v261_v3 }
  0x12 PF: > { %p888_p6 = scmp.ge.s32.totalorder %s1102_s25, 1  ;;  %p276_p7 = scmp.lt.s32.totalorder %s1102_s25, 5 }
  0x14   : > { %p277_p8 = pnand %p888_p6, %p276_p7 }
  0x15   : > { %s283_s13 = sand.u32 (!%p277_p8), 1, %s1086_s21   ;;  %s890_s14 = sshll.u32 (!%p277_p8), %s1094_s23, 6 }
  0x16   : > { %280 = sbr.rel (%p277_p8) target bundleno = 593 (0x251), region = 63  ;;  %s889_s15 = sshll.u32 (!%p277_p8), %s283_s13, 5 }
  0x17   : > { %p325_p9 = scmp.lt.s32.totalorder (!%p277_p8), %s890_s14, 255  ;;  %s1191_s20 = scalar_lea.vmem (!%p277_p8), [#allocation2], %s889_s15 }
  0x18   : > { %p892_p10 = scmp.ne.s32.totalorder (!%p277_p8), %s1094_s23, 0 }
  0x1b   : > { %s1313_s14 = smov (!%p325_p9, %s890_s14), 255  ;;  %346 = sbr.rel (%p892_p10) target bundleno = 34 (0x22), region = 71 }
  0x1c   : > { %s891_s16 = sshll.u32 %s1313_s14, 2 }
  0x1d   : > { %s1189_s19 = scalar_lea.vmem %s1300_s1, %s891_s16 }
  0x20   : > { %v893_v4 = vld [vmem:[%s1301_s2] ss:$0 sm:$0xff]  ;;  %vm354_vm0 = vcmask 261120  }
  0x21   : > { %355 = vst.msk [vmem:[%s1305_s6] sm:$0xff] %vm354_vm0, %v893_v4  ;;  %356 = vst.msk [vmem:[%s1305_s6 + $0x8] sm:$0xff] %vm354_vm0, %v893_v4 }
  0x22 PF: > { %v1022_v5 = vld [vmem:[%s1189_s19 + $0x78] sm:$0xff]   ;;  %v1026_v9 = vld [vmem:[%s1189_s19 + $0x70] sm:$0xff]   ;;  %v1030_v13 = vld [vmem:[%s1189_s19 + $0x68] sm:$0xff]   ;;  %vm723_vm1 = vcmask 261120   ;;  %p930_p11 = scmp.ne.s32.totalorder %s1094_s23, 3 }
  0x23   : > { %v1023_v6 = vld [vmem:[%s1189_s19 + $0xf8] sm:$0xff]   ;;  %938 = vmatprep.subr.bf16.mxu0 %v1022_v5  ;;  %v1027_v10 = vld [vmem:[%s1189_s19 + $0xf0] sm:$0xff]   ;;  %v1031_v14 = vld [vmem:[%s1189_s19 + $0xe8] sm:$0xff]  }
  0x24   : > { %v1024_v7 = vld [vmem:[%s1189_s19 + $0x38] sm:$0xff]   ;;  %960 = vmatprep.subr.bf16.mxu1 %v1023_v6  ;;  %v1028_v11 = vld [vmem:[%s1189_s19 + $0x30] sm:$0xff]   ;;  %v1032_v15 = vld [vmem:[%s1189_s19 + $0x28] sm:$0xff]  }
  0x25   : > { %v1025_v8 = vld [vmem:[%s1189_s19 + $0xb8] sm:$0xff]   ;;  %939 = vmatpush3.bf16.msra.mxu0 %v1024_v7  ;;  %v1029_v12 = vld [vmem:[%s1189_s19 + $0xb0] sm:$0xff]   ;;  %v1033_v16 = vld [vmem:[%s1189_s19 + $0xa8] sm:$0xff]  }
  0x26   : > { %961 = vmatpush3.bf16.msra.mxu1 %v1025_v8  ;;  %940 = vmatprep.subr.bf16.mxu0 %v1026_v9  ;;  %v1034_v17 = vld [vmem:[%s1189_s19 + $0x60] sm:$0xff]   ;;  %v1038_v21 = vld [vmem:[%s1189_s19 + $0x58] sm:$0xff]   ;;  %v1042_v25 = vld [vmem:[%s1189_s19 + $0x50] sm:$0xff]  }
  0x27   : > { %962 = vmatprep.subr.bf16.mxu1 %v1027_v10  ;;  %v1035_v18 = vld [vmem:[%s1189_s19 + $0xe0] sm:$0xff]   ;;  %v1039_v22 = vld [vmem:[%s1189_s19 + $0xd8] sm:$0xff]   ;;  %v1043_v26 = vld [vmem:[%s1189_s19 + $0xd0] sm:$0xff]  }
  0x28   : > { %v1036_v19 = vld [vmem:[%s1189_s19 + $0x20] sm:$0xff]   ;;  %v1040_v23 = vld [vmem:[%s1189_s19 + $0x18] sm:$0xff]   ;;  %v1044_v27 = vld [vmem:[%s1189_s19 + $0x10] sm:$0xff]  }
  0x29   : > { %941 = vmatpush3.bf16.msra.mxu0 %v1028_v11  ;;  %v1037_v20 = vld [vmem:[%s1189_s19 + $0xa0] sm:$0xff]   ;;  %v1041_v24 = vld [vmem:[%s1189_s19 + $0x98] sm:$0xff]   ;;  %v1045_v28 = vld [vmem:[%s1189_s19 + $0x90] sm:$0xff]  }
  0x2a   : > { %963 = vmatpush3.bf16.msra.mxu1 %v1029_v12  ;;  %942 = vmatprep.subr.bf16.mxu0 %v1030_v13  ;;  %v1046_v29 = vld [vmem:[%s1189_s19 + $0x48] sm:$0xff]   ;;  %v1050_v33 = vld [vmem:[%s1189_s19 + $0x40] sm:$0xff]  }
  0x2b   : > { %964 = vmatprep.subr.bf16.mxu1 %v1031_v14  ;;  %v1047_v30 = vld [vmem:[%s1189_s19 + $0xc8] sm:$0xff]   ;;  %v1051_v34 = vld [vmem:[%s1189_s19 + $0xc0] sm:$0xff]  }
  0x2c   : > { %v1048_v31 = vld [vmem:[%s1189_s19 + $0x8] sm:$0xff]   ;;  %v1052_v35 = vld [vmem:[%s1189_s19] sm:$0xff]  }
  0x2d   : > { %943 = vmatpush3.bf16.msra.mxu0 %v1032_v15  ;;  %v1049_v32 = vld [vmem:[%s1189_s19 + $0x88] sm:$0xff]   ;;  %v1053_v36 = vld [vmem:[%s1189_s19 + $0x80] sm:$0xff]  }
  0x2e   : > { %965 = vmatpush3.bf16.msra.mxu1 %v1033_v16  ;;  %944 = vmatprep.subr.bf16.mxu0 %v1034_v17  ;;  %v1054_v37 = vld [vmem:[%s1191_s20] ss:$16 sps:$4 sm:$0xff]   ;;  %v1056_v38 = vld [vmem:[%s1191_s20 + $0x4] ss:$16 sps:$4 sm:$0xff]   ;;  %v1057_v39 = vld [vmem:[%s1191_s20 + $0x8] ss:$16 sps:$4 sm:$0xff]  }
  0x2f   : > { %966 = vmatprep.subr.bf16.mxu1 %v1035_v18  ;;  %v1059_v40 = vld [vmem:[%s1191_s20 + $0xc] ss:$16 sps:$4 sm:$0xff]   ;;  %671 = vmatprep.mubr.bf16.mxu0 %v1056_v38  ;;  %v357_v48 = vld [vmem:[%s1305_s6] sm:$0xff] }
  0x30   : > { %712 = vmatprep.mubr.bf16.mxu1 %v1059_v40  ;;  %v358_v56 = vld [vmem:[%s1305_s6 + $0x8] sm:$0xff] }
  0x31   : > { %945 = vmatpush3.bf16.msra.mxu0 %v1036_v19 }
  0x32   : > { %967 = vmatpush3.bf16.msra.mxu1 %v1037_v20  ;;  %946 = vmatprep.subr.bf16.mxu0 %v1038_v21 }
  0x33   : > { %968 = vmatprep.subr.bf16.mxu1 %v1039_v22 }
  0x35   : > { %947 = vmatpush3.bf16.msra.mxu0 %v1040_v23 }
  0x36   : > { %969 = vmatpush3.bf16.msra.mxu1 %v1041_v24  ;;  %948 = vmatprep.subr.bf16.mxu0 %v1042_v25 }
  0x37   : > { %970 = vmatprep.subr.bf16.mxu1 %v1043_v26 }
  0x39   : > { %949 = vmatpush3.bf16.msra.mxu0 %v1044_v27 }
  0x3a   : > { %971 = vmatpush3.bf16.msra.mxu1 %v1045_v28  ;;  %950 = vmatprep.subr.bf16.mxu0 %v1046_v29 }
  0x3b   : > { %972 = vmatprep.subr.bf16.mxu1 %v1047_v30 }
  0x3d   : > { %951 = vmatpush3.bf16.msra.mxu0 %v1048_v31 }
  0x3e   : > { %973 = vmatpush3.bf16.msra.mxu1 %v1049_v32  ;;  %952 = vmatprep.subr.bf16.mxu0 %v1050_v33 }
  0x3f   : > { %974 = vmatprep.subr.bf16.mxu1 %v1051_v34 }
  0x41   : > { %953 = vmatpush3.bf16.msra.mxu0 %v1052_v35 }
  0x42   : > { %975 = vmatpush3.bf16.msra.mxu1 %v1053_v36 }
  0x44   : > { %672 = vmatmul.mubr.bf16.vlgmr.msra.gmra.mxu0 %v1054_v37 }
  0x45   : > { %713 = vmatmul.mubr.bf16.vlgmr.msra.gmra.mxu1 %v1057_v39 }
 0x104   : > { %v954_v41 = vpop.f32.mrf.mxu0 }
 0x105   : > { %v976_v42 = vpop.f32.mrf.mxu1 }
 0x106   : > { %v955_v43 = vpop.f32.mrf.mxu0 }
 0x107   : > { %v956_v44 = vadd.f32 %v955_v43, %v954_v41  ;;  %v977_v45 = vpop.f32.mrf.mxu1 }
 0x108   : > { %v978_v46 = vadd.f32 %v977_v45, %v976_v42  ;;  %v957_v47 = vpop.f32.mrf.mxu0 }
 0x109   : > { %v979_v49 = vpop.f32.mrf.mxu1 }
 0x10a   : > { %v715_v50 = vadd.f32 %v978_v46, %v956_v44  ;;  %v958_v51 = vpop.f32.mrf.mxu0 }
 0x10b   : > { %v959_v52 = vadd.f32 %v958_v51, %v957_v47  ;;  %v980_v53 = vpop.f32.mrf.mxu1 }
 0x10c   : > { %v721_v54 = vadd.f32 %v715_v50, %v357_v48  ;;  %v981_v55 = vadd.f32 %v980_v53, %v979_v49 }
 0x10e   : > { %724 = vst.msk [vmem:[%s1305_s6] sm:$0xff] %vm723_vm1, %v721_v54  ;;  %v718_v57 = vadd.f32 %v981_v55, %v959_v52  ;;  %729 = sbr.rel (%p930_p11) target bundleno = 593 (0x251), region = 75 }
 0x110   : > { %v722_v58 = vadd.f32 %v718_v57, %v358_v56 }
 0x112   : > { %725 = vst.msk [vmem:[%s1305_s6 + $0x8] sm:$0xff] %vm723_vm1, %v722_v58 }
 0x113   : > { %v732_v60 = vld [vmem:[%s1302_s3] sm:$0xff]  ;;  %v733_v63 = vld [vmem:[%s1302_s3 + $0x8] sm:$0xff] }
 0x114   : > { %v931_v20 = vld [vmem:[%s1303_s4] ss:$0 sm:$0xff] }
 0x115   : > { %v730_v59 = vld [vmem:[%s1305_s6] sm:$0xff] }
 0x116   : > { %v734_v62 = vadd.f32 %v732_v60, %v730_v59  ;;  %v932_v22 = vld [vmem:[%s1304_s5] ss:$0 sm:$0xff] }
 0x118   : > { %v736_v1 = vsel %vm723_vm1, %v734_v62, 0.0 }
 0x119   : > { %v731_v61 = vld [vmem:[%s1305_s6 + $0x8] sm:$0xff]  ;;  %737 = vadd.xlane.f32.xlu0 %v736_v1 }
 0x11a   : > { %v735_v0 = vadd.f32 %v733_v63, %v731_v61 }
 0x11c   : > { %v739_v2 = vsel %vm723_vm1, %v735_v0, 0.0 }
 0x11d   : > { %740 = vadd.xlane.f32.xlu0 %v739_v2 }
 0x1a2   : > { %v738_v3 = vpop.xlane.xlu0 %737 }
 0x1a3   : > { %v743_v4 = vmul.f32 0.03125, %v738_v3 }
 0x1a5   : > { %v745_v5 = vsub.f32 %v734_v62, %v743_v4 }
 0x1a6   : > { %v741_v6 = vpop.xlane.xlu0 %740 }
 0x1a7   : > { %v744_v7 = vmul.f32 0.03125, %v741_v6  ;;  %v747_v8 = vmul.f32 %v745_v5, %v745_v5 }
 0x1a9   : > { %v746_v9 = vsub.f32 %v735_v0, %v744_v7  ;;  %v749_v10 = vsel %vm723_vm1, %v747_v8, 0.0 }
 0x1aa   : > { %750 = vadd.xlane.f32.xlu1 %v749_v10 }
 0x1ab   : > { %v748_v11 = vmul.f32 %v746_v9, %v746_v9 }
 0x1ad   : > { %v752_v12 = vsel %vm723_vm1, %v748_v11, 0.0 }
 0x1ae   : > { %753 = vadd.xlane.f32.xlu1 %v752_v12 }
 0x233   : > { %v751_v13 = vpop.xlane.xlu1 %750 }
 0x234   : > { %v755_v14 = vmul.f32 0.03125, %v751_v13 }
 0x236   : > { %v757_v15 = vadd.f32 1e-05, %v755_v14 }
 0x237   : > { %v754_v16 = vpop.xlane.xlu1 %753 }
 0x238   : > { %1060 = vrsqrt.f32 %v757_v15  ;;  %v756_v17 = vmul.f32 0.03125, %v754_v16 }
 0x23a   : > { %v758_v18 = vadd.f32 1e-05, %v756_v17 }
 0x23c   : > { %1062 = vrsqrt.f32 %v758_v18 }
 0x245   : > { %v1061_v19 = vpop.eup %1060 }
 0x246   : > { %v761_v21 = vmul.f32 %v1061_v19, %v745_v5 }
 0x248   : > { %v770_v23 = vmul.f32 %v931_v20, %v761_v21 }
 0x249   : > { %v1063_v24 = vpop.eup %1062 }
 0x24a   : > { %v779_v25 = vadd.f32 %v932_v22, %v770_v23  ;;  %v762_v26 = vmul.f32 %v1063_v24, %v746_v9 }
 0x24c   : > { %781 = vst.msk [vmem:[%s1305_s6] sm:$0xff] %vm723_vm1, %v779_v25  ;;  %v771_v27 = vmul.f32 %v931_v20, %v762_v26 }
 0x24e   : > { %v780_v28 = vadd.f32 %v932_v22, %v771_v27 }
 0x250   : > { %782 = vst.msk [vmem:[%s1305_s6 + $0x8] sm:$0xff] %vm723_vm1, %v780_v28 }
 0x251 PF: > { %s16_s25 = sadd.s32 1, %s1102_s25   ;;  %s1306_s21 = smov %s1090_s22 }
 0x252   : > { %p13_p12 = scmp.ge.s32.totalorder %s16_s25, 6   ;;  %s1307_s22 = smov %s1174_s29 }
 0x253   : > { %s1308_s23 = smov %s1098_s24  ;;  %s1309_s24 = smov %s1311_s26 }
 0x254   :  { %15 = sbr.rel (!%p13_p12) target bundleno = 3 (0x3), region = 116 }

</bundles_post_ra>
